<compile_context>
chip_gen: v7x
topology: tpu7x:2x2x1
jax: 0.10.0
libtpu: 0.0.40
codegen_flags: <defaults>
</compile_context>

<pallas_src>
import functools

import jax
import jax.numpy as jnp
from jax import lax
from jax.experimental import pallas as pl
from jax.experimental.pallas import tpu as pltpu


def _round_up(x, m):
    return (x + m - 1) // m * m


_TM, _TM_BIG, _TN, _TK = 512, 2048, 512, 2048
_VMEM_BUDGET = 26 * 1024 * 1024      # per-kernel tile footprint cap (double-buffered)
_VMEM_LIMIT = 40 * 1024 * 1024       # scoped VMEM limit (safe on v5e/v6e/v7x)


# ----------------------------------------------------------------------------
# Pallas kernel: (M, N, K)-tiled matmul, bf16 operands, f32 accumulation, one
# store per grid step, fused epilogue: (acc * inv_sigma) + bias, opt. LeakyReLU.
# ----------------------------------------------------------------------------
def _matmul_kernel(x_ref, w_ref, b_ref, scale_ref, o_ref, *acc, nk, neg_slope):
    acc_ref = acc[0] if acc else None
    k = pl.program_id(2)

    partial = jnp.dot(x_ref[...], w_ref[...], preferred_element_type=jnp.float32)

    def _epilogue(s):
        y = s * scale_ref[0, 0] + b_ref[...]
        if neg_slope is not None:
            y = jnp.where(y >= 0.0, y, jnp.float32(neg_slope) * y)
        return y.astype(o_ref.dtype)

    if nk == 1:
        # Streaming layer: single store, no accumulator traffic at all.
        o_ref[...] = _epilogue(partial)
    else:
        # dst is the f32 accumulator: either the resident f32 output block or a
        # VMEM scratch (used when the output dtype is bf16).
        dst = o_ref if acc_ref is None else acc_ref

        @pl.when(k == 0)
        def _():
            dst[...] = partial

        @pl.when(jnp.logical_and(k > 0, k < nk - 1))
        def _():
            dst[...] = dst[...] + partial

        @pl.when(k == nk - 1)
        def _():
            o_ref[...] = _epilogue(dst[...] + partial)


def _fit_tile(dim, cap, align):
    """Smallest-padding tile <= cap, multiple of align, covering dim."""
    dim_a = _round_up(dim, align)
    if dim_a <= cap:
        return dim_a
    nsteps = -(-dim_a // cap)
    return _round_up(-(-dim_a // nsteps), align)


def _choose_tm(m, cap):
    """Prefer a multiple of 16 that divides M (no M-padding copy); else pad."""
    if m <= 16:
        return _round_up(m, 8)
    best = 0
    d = 16
    limit = min(cap, m)
    while d <= limit:
        if m % d == 0:
            best = d
        d += 16
    if best:
        return best
    return min(cap, _round_up(m, 16))


def _vmem_bytes(tm, tn, tk, out_bytes, use_acc):
    b = 2 * (tm * tk * 2 + tk * tn * 2 + tm * tn * out_bytes) + 2 * tn * 4
    if use_acc:
        b += tm * tn * 4
    return b


def matmul_fused(x, w, b=None, inv_scale=None, neg_slope=None,
                 out_dtype=jnp.float32):
    """out = leaky_relu(((x @ w) * inv_scale) + b), MXU matmul via Pallas.

    x: (M, K), w: (K, N), b: (N,) or None, inv_scale: scalar or None.
    Operands are cast to bf16 (f32 accumulation); output dtype selectable.
    """
    M, K = x.shape
    Kw, N = w.shape
    assert K == Kw

    tn = _fit_tile(N, _TN, 128)
    tk = _fit_tile(K, _TK, 128)
    Np, Kp = _round_up(N, tn), _round_up(K, tk)
    nn, nk = Np // tn, Kp // tk

    out_is_f32 = (out_dtype == jnp.float32)
    out_bytes = 4 if out_is_f32 else 2
    use_acc = (nk > 1) and (not out_is_f32)

    tm_cap = _TM_BIG if (nn == 1 and nk == 1) else _TM
    tm = _choose_tm(M, tm_cap)
    # v7x megacore: if the whole problem would collapse to one grid step but M is
    # large, split M so both TensorCores get work.
    if nn == 1 and nk == 1 and M >= 256 and _round_up(M, tm) // tm == 1:
        tm = _choose_tm(M, max(16, _round_up(-(-M // 2), 16)))
    # VMEM budget cap (double-buffered tiles must stay well inside v7x's 64 MiB).
    while tm > 16 and _vmem_bytes(tm, tn, tk, out_bytes, use_acc) > _VMEM_BUDGET:
        tm = max(16, _round_up(tm // 2, 16))

    Mp = _round_up(M, tm)
    nm = Mp // tm

    xb = x if x.dtype == jnp.bfloat16 else x.astype(jnp.bfloat16)
    wb = w.astype(jnp.bfloat16)
    if (Mp, Kp) != (M, K):
        xb = jnp.pad(xb, ((0, Mp - M), (0, Kp - K)))   # K zero-pad is required
    if (Kp, Np) != (K, N):
        wb = jnp.pad(wb, ((0, Kp - K), (0, Np - N)))

    if b is None:
        bp = jnp.zeros((1, Np), jnp.float32)
    else:
        bp = jnp.pad(b.astype(jnp.float32).reshape(1, N), ((0, 0), (0, Np - N)))

    if inv_scale is None:
        inv_scale = 1.0
    scale = jnp.asarray(inv_scale, jnp.float32).reshape(1, 1)

    scratch = [pltpu.VMEM((tm, tn), jnp.float32)] if use_acc else []

    out = pl.pallas_call(
        functools.partial(_matmul_kernel, nk=nk, neg_slope=neg_slope),
        out_shape=jax.ShapeDtypeStruct((Mp, Np), out_dtype),
        grid_spec=pltpu.PrefetchScalarGridSpec(
            num_scalar_prefetch=0,
            grid=(nm, nn, nk),
            in_specs=[
                pl.BlockSpec((tm, tk), lambda i, j, k: (i, k)),
                pl.BlockSpec((tk, tn), lambda i, j, k: (k, j)),
                pl.BlockSpec((1, tn), lambda i, j, k: (0, j)),
                pl.BlockSpec(memory_space=pltpu.MemorySpace.SMEM),
            ],
            out_specs=pl.BlockSpec((tm, tn), lambda i, j, k: (i, j)),
            scratch_shapes=scratch,
        ),
        compiler_params=pltpu.CompilerParams(
            dimension_semantics=("parallel", "parallel", "arbitrary"),
            vmem_limit_bytes=_VMEM_LIMIT,
        ),
    )(xb, wb, bp, scale)

    if (Mp, Np) != (M, N):
        out = out[:M, :N]
    return out


# ----------------------------------------------------------------------------
# Convolution via im2col (XLA glue, fused under jit) + Pallas matmul (hot path).
# ----------------------------------------------------------------------------
def _im2col(x_nhwc, kh, kw, stride, pad):
    N, H, W, C = x_nhwc.shape
    xpad = jnp.pad(x_nhwc, ((0, 0), (pad, pad), (pad, pad), (0, 0)))
    Ho = (H + 2 * pad - kh) // stride + 1
    Wo = (W + 2 * pad - kw) // stride + 1
    cols = []
    for i in range(kh):
        for j in range(kw):
            cols.append(xpad[:, i:i + stride * Ho:stride,
                             j:j + stride * Wo:stride, :])
    patches = jnp.stack(cols, axis=3)                      # (N, Ho, Wo, kh*kw, C)
    return patches.reshape(N * Ho * Wo, kh * kw * C), Ho, Wo


def conv2d_pallas(x_nhwc, w_oihw, b=None, stride=1, pad=0,
                  inv_scale=None, neg_slope=None, out_dtype=jnp.float32):
    Cout, Cin, kh, kw = w_oihw.shape
    N, H, W, C = x_nhwc.shape
    if pad == 0 and kh == H and kw == W:
        # "Full-image" kernel (final conv2): 1x1 output, no patch duplication.
        cols = x_nhwc.reshape(N, H * W * C)
        Ho = Wo = 1
    else:
        cols, Ho, Wo = _im2col(x_nhwc, kh, kw, stride, pad)
    # reorder weight to match im2col column ordering (kh, kw, Cin) -> (K, Cout)
    wm = jnp.transpose(w_oihw, (2, 3, 1, 0)).reshape(kh * kw * Cin, Cout)
    y = matmul_fused(cols, wm, b, inv_scale, neg_slope, out_dtype=out_dtype)
    return y.reshape(N, Ho, Wo, Cout)


# ----------------------------------------------------------------------------
# Spectral normalization (single power iteration, as in max_singular_value Ip=1).
# Tiny matvecs -> plain JAX glue; the resulting 1/sigma is fused into the kernel.
# ----------------------------------------------------------------------------
def _l2normalize(v, eps=1e-12):
    return v / (jnp.sqrt(jnp.sum(v ** 2)) + eps)


def spectral_sigma(w_mat, u):
    v = _l2normalize(jnp.matmul(u, w_mat))
    u2 = _l2normalize(jnp.matmul(v, w_mat.T))
    sigma = jnp.matmul(jnp.matmul(v, w_mat.T), u2.T)
    return sigma.reshape(())


# ----------------------------------------------------------------------------
# AngleLinear (SphereFace margin, m=4, phiflag=True).  The big matmul goes
# through the Pallas kernel; the angle-margin math is tiny elementwise glue.
# ----------------------------------------------------------------------------
def angle_linear(x, weight, matmul_fn, m=4):
    # torch: w.renorm(2, 1, 1e-5).mul(1e5)  -> unit-norm columns
    col_norm = jnp.sqrt(jnp.sum(weight ** 2, axis=0, keepdims=True))
    renorm = jnp.where(col_norm > 1e-5, 1e-5 / (col_norm + 1e-7), 1.0) * 1e5
    ww = weight * renorm

    xlen = jnp.sqrt(jnp.sum(x ** 2, axis=1, keepdims=True))      # (N, 1)
    wlen = jnp.sqrt(jnp.sum(ww ** 2, axis=0, keepdims=True))     # (1, out)

    cos_theta = matmul_fn(x, ww) / xlen / wlen
    cos_theta = jnp.clip(cos_theta, -1.0, 1.0)

    cos_m_theta = 8.0 * cos_theta ** 4 - 8.0 * cos_theta ** 2 + 1.0   # mlambda[4]
    theta = jnp.arccos(cos_theta)
    k = jnp.floor(m * theta / 3.14159265)
    sign = 1.0 - 2.0 * jnp.mod(k, 2.0)                                # (-1)**k
    phi_theta = sign * cos_m_theta - 2.0 * k

    return cos_theta * xlen, phi_theta * xlen, cos_theta


# ----------------------------------------------------------------------------
# Parameters (deterministic synthetic init) and forward pass.
# ----------------------------------------------------------------------------
def init_params(key, image_size, conv_dim, c_dim, repeat_num, classnum):
    keys = iter(jax.random.split(key, 3 * repeat_num + 6))
    main = []
    in_ch, out_ch = 3, conv_dim
    for _ in range(repeat_num):
        w = 0.05 * jax.random.normal(next(keys), (out_ch, in_ch, 4, 4), jnp.float32)
        b = 0.05 * jax.random.normal(next(keys), (out_ch,), jnp.float32)
        u = jax.random.normal(next(keys), (1, out_ch), jnp.float32)
        main.append((w, b, u))
        in_ch, out_ch = out_ch, out_ch * 2
    curr = in_ch
    k_size = image_size // (2 ** repeat_num)
    w1 = 0.05 * jax.random.normal(next(keys), (1, curr, 3, 3), jnp.float32)
    u1 = jax.random.normal(next(keys), (1, 1), jnp.float32)
    w2 = 0.05 * jax.random.normal(next(keys), (c_dim + 512, curr, k_size, k_size), jnp.float32)
    u2 = jax.random.normal(next(keys), (1, c_dim + 512), jnp.float32)
    wf = jax.random.uniform(next(keys), (512, classnum), jnp.float32, -1.0, 1.0)
    return {"main": main, "conv1": (w1, u1), "conv2": (w2, u2), "fc": wf}


def discriminator_forward(x_nchw, params, c_dim):
    # NCHW (PyTorch convention) -> NHWC for the kernel path; bf16 upstream cast
    # so the materialized im2col matrices (and all conv intermediates) are bf16.
    h = jnp.transpose(x_nchw, (0, 2, 3, 1)).astype(jnp.bfloat16)
    for (w, b, u) in params["main"]:
        sigma = spectral_sigma(w.reshape(w.shape[0], -1), u)
        h = conv2d_pallas(h, w, b, stride=2, pad=1,
                          inv_scale=1.0 / sigma, neg_slope=0.01,
                          out_dtype=jnp.bfloat16)

    w1, u1 = params["conv1"]
    s1 = spectral_sigma(w1.reshape(w1.shape[0], -1), u1)
    out_real = conv2d_pallas(h, w1, None, stride=1, pad=1, inv_scale=1.0 / s1,
                             out_dtype=jnp.float32)

    w2, u2 = params["conv2"]
    s2 = spectral_sigma(w2.reshape(w2.shape[0], -1), u2)
    out_aux_full = conv2d_pallas(h, w2, None, stride=1, pad=0, inv_scale=1.0 / s2,
                                 out_dtype=jnp.float32)

    out_feature = out_aux_full[..., -512:].reshape(-1, 512)
    out_aux = out_aux_full[..., :c_dim]

    wf = params["fc"]
    cos_theta, phi_theta, _ = angle_linear(out_feature, wf, matmul_fused)

    out_real_nchw = jnp.transpose(out_real, (0, 3, 1, 2))
    out_aux_nchw = jnp.transpose(out_aux, (0, 3, 1, 2))
    return (jnp.squeeze(out_real_nchw), jnp.squeeze(out_aux_nchw),
            (cos_theta, phi_theta))


# ----------------------------------------------------------------------------
# Plain-JAX reference (for correctness check of the Pallas path).
# ----------------------------------------------------------------------------
def _conv2d_ref(x_nchw, w, b, stride, pad):
    y = lax.conv_general_dilated(
        x_nchw, w, (stride, stride), [(pad, pad), (pad, pad)],
        dimension_numbers=("NCHW", "OIHW", "NCHW"),
        precision=lax.Precision.HIGHEST)
    if b is not None:
        y = y + b.reshape(1, -1, 1, 1)
    return y


def reference_forward(x_nchw, params, c_dim):
    lrelu = lambda z: jnp.where(z >= 0, z, 0.01 * z)
    h = x_nchw
    for (w, b, u) in params["main"]:
        s = spectral_sigma(w.reshape(w.shape[0], -1), u)
        h = lrelu(_conv2d_ref(h, w / s, b, 2, 1))
    w1, u1 = params["conv1"]
    out_real = _conv2d_ref(h, w1 / spectral_sigma(w1.reshape(w1.shape[0], -1), u1), None, 1, 1)
    w2, u2 = params["conv2"]
    out_aux = _conv2d_ref(h, w2 / spectral_sigma(w2.reshape(w2.shape[0], -1), u2), None, 1, 0)
    out_feature = out_aux[:, -512:, :, :].reshape(-1, 512)   # spatial is 1x1
    out_aux = out_aux[:, :c_dim, :, :]
    wf = params["fc"]
    ref_mm = lambda a, b_: jnp.matmul(a, b_, precision=lax.Precision.HIGHEST)
    cos_t, phi_t, cos_norm = angle_linear(out_feature, wf, ref_mm)
    return jnp.squeeze(out_real), jnp.squeeze(out_aux), (cos_t, phi_t), cos_norm


if __name__ == "__main__":
    # Small but structurally faithful config: 3 downsampling SNConv layers,
    # final spatial k_size = image_size / 2**repeat_num = 2, AngleLinear(512, classnum).
    image_size, conv_dim, c_dim, repeat_num, classnum, batch = 16, 8, 5, 3, 10, 2

    key = jax.random.PRNGKey(0)
    kp, kx = jax.random.split(key)
    params = init_params(kp, image_size, conv_dim, c_dim, repeat_num, classnum)
    x = jax.random.normal(kx, (batch, 3, image_size, image_size), jnp.float32)

    fwd = jax.jit(discriminator_forward, static_argnums=2)
    out_real, out_aux, (cos_t, phi_t) = fwd(x, params, c_dim)
    jax.block_until_ready((out_real, out_aux, cos_t, phi_t))

    k_size = image_size // (2 ** repeat_num)
    assert out_real.shape == (batch, k_size, k_size), out_real.shape
    assert out_aux.shape == (batch, c_dim), out_aux.shape
    assert cos_t.shape == (batch, classnum), cos_t.shape
    assert phi_t.shape == (batch, classnum), phi_t.shape

    r_real, r_aux, (r_cos, r_phi), r_cos_norm = reference_forward(x, params, c_dim)

    RTOL, ATOL = 2e-2, 8e-3   # bf16 matmuls/intermediates vs f32 HIGHEST reference
    assert bool(jnp.allclose(out_real, r_real, rtol=RTOL, atol=ATOL))
    assert bool(jnp.allclose(out_aux, r_aux, rtol=RTOL, atol=ATOL))
    assert bool(jnp.allclose(cos_t, r_cos, rtol=RTOL, atol=ATOL))

    # phi_theta is discontinuous at k = floor(m*theta/pi) boundaries; compare away from them.
    frac = 4.0 * jnp.arccos(r_cos_norm) / jnp.pi
    safe = (jnp.abs(frac - jnp.round(frac)) > 0.02) & (jnp.abs(r_cos_norm) < 0.999)
    phi_ok = jnp.abs(phi_t - r_phi) <= ATOL + RTOL * jnp.abs(r_phi)
    assert bool(jnp.all(jnp.where(safe, phi_ok, True)))

    print("KERNEL_OK")
</pallas_src>

<mosaic_0001>
module attributes {stable_mosaic.version = 11 : i64} {
  func.func @_matmul_kernel(%arg0: i32, %arg1: i32, %arg2: i32, %arg3: memref<128x128xbf16, #tpu.memory_space<vmem>>, %arg4: memref<128x128xbf16, #tpu.memory_space<vmem>>, %arg5: memref<1x128xf32, #tpu.memory_space<vmem>>, %arg6: memref<1x1xf32, #tpu.memory_space<smem>>, %arg7: memref<128x128xbf16, #tpu.memory_space<vmem>>) attributes {dimension_semantics = [#tpu.dimension_semantics<parallel>, #tpu.dimension_semantics<parallel>, #tpu.dimension_semantics<arbitrary>], iteration_bounds = array<i64: 1, 1, 1>, scalar_prefetch = 0 : i64, scratch_operands = 0 : i64, tpu.core_type = #tpu.core_type<tc>, window_params = [{transform_indices = @transform_0, window_bounds = array<i64: 128, 128>}, {transform_indices = @transform_1, window_bounds = array<i64: 128, 128>}, {transform_indices = @transform_2, window_bounds = array<i64: 1, 128>}, {transform_indices = @transform_3, window_bounds = array<i64: 1, 1>}, {transform_indices = @transform_4, window_bounds = array<i64: 128, 128>}]} {
    %c0 = arith.constant 0 : index
    %c0_0 = arith.constant 0 : index
    %0 = vector.load %arg3[%c0, %c0_0] : memref<128x128xbf16, #tpu.memory_space<vmem>>, vector<128x128xbf16>
    %c0_1 = arith.constant 0 : index
    %c0_2 = arith.constant 0 : index
    %1 = vector.load %arg4[%c0_1, %c0_2] : memref<128x128xbf16, #tpu.memory_space<vmem>>, vector<128x128xbf16>
    %cst = arith.constant dense<0.000000e+00> : vector<128x128xf32>
    %2 = tpu.matmul %0, %1, %cst {dimension_numbers = #tpu.dot_dimension_numbers<[1], [0], [0], [1], [0, 0, 1, 1], [], []>} : vector<128x128xbf16>, vector<128x128xbf16>, vector<128x128xf32> -> vector<128x128xf32>
    %c0_3 = arith.constant 0 : index
    %c0_4 = arith.constant 0 : index
    %3 = memref.load %arg6[%c0_3, %c0_4] : memref<1x1xf32, #tpu.memory_space<smem>>
    %4 = vector.broadcast %3 : f32 to vector<128x128xf32>
    %5 = arith.mulf %2, %4 : vector<128x128xf32>
    %c0_5 = arith.constant 0 : index
    %c0_6 = arith.constant 0 : index
    %6 = vector.load %arg5[%c0_5, %c0_6] : memref<1x128xf32, #tpu.memory_space<vmem>>, vector<1x128xf32>
    %7 = vector.broadcast %6 : vector<1x128xf32> to vector<128x128xf32>
    %8 = arith.addf %5, %7 : vector<128x128xf32>
    %cst_7 = arith.constant 0.000000e+00 : f32
    %9 = vector.broadcast %cst_7 : f32 to vector<128x128xf32>
    %10 = arith.cmpf oge, %8, %9 : vector<128x128xf32>
    %cst_8 = arith.constant 0.00999999977 : f32
    %11 = vector.broadcast %cst_8 : f32 to vector<128x128xf32>
    %12 = arith.mulf %11, %8 : vector<128x128xf32>
    %13 = arith.select %10, %8, %12 : vector<128x128xi1>, vector<128x128xf32>
    %14 = arith.truncf %13 : vector<128x128xf32> to vector<128x128xbf16>
    %c0_9 = arith.constant 0 : index
    %c0_10 = arith.constant 0 : index
    %15 = vector.load %arg7[%c0_9, %c0_10] : memref<128x128xbf16, #tpu.memory_space<vmem>>, vector<128x128xbf16>
    tpu.vector_store %arg7[%c0_9, %c0_10], %14 {strides = array<i32>} : memref<128x128xbf16, #tpu.memory_space<vmem>>, vector<128x128xbf16>,
    return
  }
  func.func @transform_0(%arg0: i32, %arg1: i32, %arg2: i32) -> (i32, i32) {
    %c0_i32 = arith.constant 0 : i32
    return %arg0, %arg2 : i32, i32
  }
  func.func @transform_1(%arg0: i32, %arg1: i32, %arg2: i32) -> (i32, i32) {
    %c0_i32 = arith.constant 0 : i32
    return %arg2, %arg1 : i32, i32
  }
  func.func @transform_2(%arg0: i32, %arg1: i32, %arg2: i32) -> (i32, i32) {
    %c0_i32 = arith.constant 0 : i32
    %c0_i32_0 = arith.constant 0 : i32
    return %c0_i32, %arg1 : i32, i32
  }
  func.func @transform_3(%arg0: i32, %arg1: i32, %arg2: i32) -> (i32, i32) {
    %c0_i32 = arith.constant 0 : i32
    %c0_i32_0 = arith.constant 0 : i32
    %c0_i32_1 = arith.constant 0 : i32
    return %c0_i32, %c0_i32_0 : i32, i32
  }
  func.func @transform_4(%arg0: i32, %arg1: i32, %arg2: i32) -> (i32, i32) {
    %c0_i32 = arith.constant 0 : i32
    return %arg0, %arg1 : i32, i32
  }
}

module attributes {stable_mosaic.version = 11 : i64} {
  func.func @_matmul_kernel(%arg0: i32, %arg1: i32, %arg2: i32, %arg3: memref<32x128xbf16, #tpu.memory_space<vmem>>, %arg4: memref<128x128xbf16, #tpu.memory_space<vmem>>, %arg5: memref<1x128xf32, #tpu.memory_space<vmem>>, %arg6: memref<1x1xf32, #tpu.memory_space<smem>>, %arg7: memref<32x128xbf16, #tpu.memory_space<vmem>>) attributes {dimension_semantics = [#tpu.dimension_semantics<parallel>, #tpu.dimension_semantics<parallel>, #tpu.dimension_semantics<arbitrary>], iteration_bounds = array<i64: 1, 1, 1>, scalar_prefetch = 0 : i64, scratch_operands = 0 : i64, tpu.core_type = #tpu.core_type<tc>, window_params = [{transform_indices = @transform_0, window_bounds = array<i64: 32, 128>}, {transform_indices = @transform_1, window_bounds = array<i64: 128, 128>}, {transform_indices = @transform_2, window_bounds = array<i64: 1, 128>}, {transform_indices = @transform_3, window_bounds = array<i64: 1, 1>}, {transform_indices = @transform_4, window_bounds = array<i64: 32, 128>}]} {
    %c0 = arith.constant 0 : index
    %c0_0 = arith.constant 0 : index
    %0 = vector.load %arg3[%c0, %c0_0] : memref<32x128xbf16, #tpu.memory_space<vmem>>, vector<32x128xbf16>
    %c0_1 = arith.constant 0 : index
    %c0_2 = arith.constant 0 : index
    %1 = vector.load %arg4[%c0_1, %c0_2] : memref<128x128xbf16, #tpu.memory_space<vmem>>, vector<128x128xbf16>
    %cst = arith.constant dense<0.000000e+00> : vector<32x128xf32>
    %2 = tpu.matmul %0, %1, %cst {dimension_numbers = #tpu.dot_dimension_numbers<[1], [0], [0], [1], [0, 0, 1, 1], [], []>} : vector<32x128xbf16>, vector<128x128xbf16>, vector<32x128xf32> -> vector<32x128xf32>
    %c0_3 = arith.constant 0 : index
    %c0_4 = arith.constant 0 : index
    %3 = memref.load %arg6[%c0_3, %c0_4] : memref<1x1xf32, #tpu.memory_space<smem>>
    %4 = vector.broadcast %3 : f32 to vector<32x128xf32>
    %5 = arith.mulf %2, %4 : vector<32x128xf32>
    %c0_5 = arith.constant 0 : index
    %c0_6 = arith.constant 0 : index
    %6 = vector.load %arg5[%c0_5, %c0_6] : memref<1x128xf32, #tpu.memory_space<vmem>>, vector<1x128xf32>
    %7 = vector.broadcast %6 : vector<1x128xf32> to vector<32x128xf32>
    %8 = arith.addf %5, %7 : vector<32x128xf32>
    %cst_7 = arith.constant 0.000000e+00 : f32
    %9 = vector.broadcast %cst_7 : f32 to vector<32x128xf32>
    %10 = arith.cmpf oge, %8, %9 : vector<32x128xf32>
    %cst_8 = arith.constant 0.00999999977 : f32
    %11 = vector.broadcast %cst_8 : f32 to vector<32x128xf32>
    %12 = arith.mulf %11, %8 : vector<32x128xf32>
    %13 = arith.select %10, %8, %12 : vector<32x128xi1>, vector<32x128xf32>
    %14 = arith.truncf %13 : vector<32x128xf32> to vector<32x128xbf16>
    %c0_9 = arith.constant 0 : index
    %c0_10 = arith.constant 0 : index
    %15 = vector.load %arg7[%c0_9, %c0_10] : memref<32x128xbf16, #tpu.memory_space<vmem>>, vector<32x128xbf16>
    tpu.vector_store %arg7[%c0_9, %c0_10], %14 {strides = array<i32>} : memref<32x128xbf16, #tpu.memory_space<vmem>>, vector<32x128xbf16>,
    return
  }
  func.func @transform_0(%arg0: i32, %arg1: i32, %arg2: i32) -> (i32, i32) {
    %c0_i32 = arith.constant 0 : i32
    return %arg0, %arg2 : i32, i32
  }
  func.func @transform_1(%arg0: i32, %arg1: i32, %arg2: i32) -> (i32, i32) {
    %c0_i32 = arith.constant 0 : i32
    return %arg2, %arg1 : i32, i32
  }
  func.func @transform_2(%arg0: i32, %arg1: i32, %arg2: i32) -> (i32, i32) {
    %c0_i32 = arith.constant 0 : i32
    %c0_i32_0 = arith.constant 0 : i32
    return %c0_i32, %arg1 : i32, i32
  }
  func.func @transform_3(%arg0: i32, %arg1: i32, %arg2: i32) -> (i32, i32) {
    %c0_i32 = arith.constant 0 : i32
    %c0_i32_0 = arith.constant 0 : i32
    %c0_i32_1 = arith.constant 0 : i32
    return %c0_i32, %c0_i32_0 : i32, i32
  }
  func.func @transform_4(%arg0: i32, %arg1: i32, %arg2: i32) -> (i32, i32) {
    %c0_i32 = arith.constant 0 : i32
    return %arg0, %arg1 : i32, i32
  }
}

module attributes {stable_mosaic.version = 11 : i64} {
  func.func @_matmul_kernel(%arg0: i32, %arg1: i32, %arg2: i32, %arg3: memref<8x256xbf16, #tpu.memory_space<vmem>>, %arg4: memref<256x128xbf16, #tpu.memory_space<vmem>>, %arg5: memref<1x128xf32, #tpu.memory_space<vmem>>, %arg6: memref<1x1xf32, #tpu.memory_space<smem>>, %arg7: memref<8x128xbf16, #tpu.memory_space<vmem>>) attributes {dimension_semantics = [#tpu.dimension_semantics<parallel>, #tpu.dimension_semantics<parallel>, #tpu.dimension_semantics<arbitrary>], iteration_bounds = array<i64: 1, 1, 1>, scalar_prefetch = 0 : i64, scratch_operands = 0 : i64, tpu.core_type = #tpu.core_type<tc>, window_params = [{transform_indices = @transform_0, window_bounds = array<i64: 8, 256>}, {transform_indices = @transform_1, window_bounds = array<i64: 256, 128>}, {transform_indices = @transform_2, window_bounds = array<i64: 1, 128>}, {transform_indices = @transform_3, window_bounds = array<i64: 1, 1>}, {transform_indices = @transform_4, window_bounds = array<i64: 8, 128>}]} {
    %c0 = arith.constant 0 : index
    %c0_0 = arith.constant 0 : index
    %0 = vector.load %arg3[%c0, %c0_0] : memref<8x256xbf16, #tpu.memory_space<vmem>>, vector<8x256xbf16>
    %c0_1 = arith.constant 0 : index
    %c0_2 = arith.constant 0 : index
    %1 = vector.load %arg4[%c0_1, %c0_2] : memref<256x128xbf16, #tpu.memory_space<vmem>>, vector<256x128xbf16>
    %cst = arith.constant dense<0.000000e+00> : vector<8x128xf32>
    %2 = tpu.matmul %0, %1, %cst {dimension_numbers = #tpu.dot_dimension_numbers<[1], [0], [0], [1], [0, 0, 1, 1], [], []>} : vector<8x256xbf16>, vector<256x128xbf16>, vector<8x128xf32> -> vector<8x128xf32>
    %c0_3 = arith.constant 0 : index
    %c0_4 = arith.constant 0 : index
    %3 = memref.load %arg6[%c0_3, %c0_4] : memref<1x1xf32, #tpu.memory_space<smem>>
    %4 = vector.broadcast %3 : f32 to vector<8x128xf32>
    %5 = arith.mulf %2, %4 : vector<8x128xf32>
    %c0_5 = arith.constant 0 : index
    %c0_6 = arith.constant 0 : index
    %6 = vector.load %arg5[%c0_5, %c0_6] : memref<1x128xf32, #tpu.memory_space<vmem>>, vector<1x128xf32>
    %7 = vector.broadcast %6 : vector<1x128xf32> to vector<8x128xf32>
    %8 = arith.addf %5, %7 : vector<8x128xf32>
    %cst_7 = arith.constant 0.000000e+00 : f32
    %9 = vector.broadcast %cst_7 : f32 to vector<8x128xf32>
    %10 = arith.cmpf oge, %8, %9 : vector<8x128xf32>
    %cst_8 = arith.constant 0.00999999977 : f32
    %11 = vector.broadcast %cst_8 : f32 to vector<8x128xf32>
    %12 = arith.mulf %11, %8 : vector<8x128xf32>
    %13 = arith.select %10, %8, %12 : vector<8x128xi1>, vector<8x128xf32>
    %14 = arith.truncf %13 : vector<8x128xf32> to vector<8x128xbf16>
    %c0_9 = arith.constant 0 : index
    %c0_10 = arith.constant 0 : index
    %15 = vector.load %arg7[%c0_9, %c0_10] : memref<8x128xbf16, #tpu.memory_space<vmem>>, vector<8x128xbf16>
    tpu.vector_store %arg7[%c0_9, %c0_10], %14 {strides = array<i32>} : memref<8x128xbf16, #tpu.memory_space<vmem>>, vector<8x128xbf16>,
    return
  }
  func.func @transform_0(%arg0: i32, %arg1: i32, %arg2: i32) -> (i32, i32) {
    %c0_i32 = arith.constant 0 : i32
    return %arg0, %arg2 : i32, i32
  }
  func.func @transform_1(%arg0: i32, %arg1: i32, %arg2: i32) -> (i32, i32) {
    %c0_i32 = arith.constant 0 : i32
    return %arg2, %arg1 : i32, i32
  }
  func.func @transform_2(%arg0: i32, %arg1: i32, %arg2: i32) -> (i32, i32) {
    %c0_i32 = arith.constant 0 : i32
    %c0_i32_0 = arith.constant 0 : i32
    return %c0_i32, %arg1 : i32, i32
  }
  func.func @transform_3(%arg0: i32, %arg1: i32, %arg2: i32) -> (i32, i32) {
    %c0_i32 = arith.constant 0 : i32
    %c0_i32_0 = arith.constant 0 : i32
    %c0_i32_1 = arith.constant 0 : i32
    return %c0_i32, %c0_i32_0 : i32, i32
  }
  func.func @transform_4(%arg0: i32, %arg1: i32, %arg2: i32) -> (i32, i32) {
    %c0_i32 = arith.constant 0 : i32
    return %arg0, %arg1 : i32, i32
  }
}

module attributes {stable_mosaic.version = 11 : i64} {
  func.func @_matmul_kernel(%arg0: i32, %arg1: i32, %arg2: i32, %arg3: memref<8x128xbf16, #tpu.memory_space<vmem>>, %arg4: memref<128x384xbf16, #tpu.memory_space<vmem>>, %arg5: memref<1x384xf32, #tpu.memory_space<vmem>>, %arg6: memref<1x1xf32, #tpu.memory_space<smem>>, %arg7: memref<8x384xf32, #tpu.memory_space<vmem>>) attributes {dimension_semantics = [#tpu.dimension_semantics<parallel>, #tpu.dimension_semantics<parallel>, #tpu.dimension_semantics<arbitrary>], iteration_bounds = array<i64: 1, 2, 1>, scalar_prefetch = 0 : i64, scratch_operands = 0 : i64, tpu.core_type = #tpu.core_type<tc>, window_params = [{transform_indices = @transform_0, window_bounds = array<i64: 8, 128>}, {transform_indices = @transform_1, window_bounds = array<i64: 128, 384>}, {transform_indices = @transform_2, window_bounds = array<i64: 1, 384>}, {transform_indices = @transform_3, window_bounds = array<i64: 1, 1>}, {transform_indices = @transform_4, window_bounds = array<i64: 8, 384>}]} {
    %c0 = arith.constant 0 : index
    %c0_0 = arith.constant 0 : index
    %0 = vector.load %arg3[%c0, %c0_0] : memref<8x128xbf16, #tpu.memory_space<vmem>>, vector<8x128xbf16>
    %c0_1 = arith.constant 0 : index
    %c0_2 = arith.constant 0 : index
    %1 = vector.load %arg4[%c0_1, %c0_2] : memref<128x384xbf16, #tpu.memory_space<vmem>>, vector<128x384xbf16>
    %cst = arith.constant dense<0.000000e+00> : vector<8x384xf32>
    %2 = tpu.matmul %0, %1, %cst {dimension_numbers = #tpu.dot_dimension_numbers<[1], [0], [0], [1], [0, 0, 1, 1], [], []>} : vector<8x128xbf16>, vector<128x384xbf16>, vector<8x384xf32> -> vector<8x384xf32>
    %c0_3 = arith.constant 0 : index
    %c0_4 = arith.constant 0 : index
    %3 = memref.load %arg6[%c0_3, %c0_4] : memref<1x1xf32, #tpu.memory_space<smem>>
    %4 = vector.broadcast %3 : f32 to vector<8x384xf32>
    %5 = arith.mulf %2, %4 : vector<8x384xf32>
    %c0_5 = arith.constant 0 : index
    %c0_6 = arith.constant 0 : index
    %6 = vector.load %arg5[%c0_5, %c0_6] : memref<1x384xf32, #tpu.memory_space<vmem>>, vector<1x384xf32>
    %7 = vector.broadcast %6 : vector<1x384xf32> to vector<8x384xf32>
    %8 = arith.addf %5, %7 : vector<8x384xf32>
    %c0_7 = arith.constant 0 : index
    %c0_8 = arith.constant 0 : index
    %9 = vector.load %arg7[%c0_7, %c0_8] : memref<8x384xf32, #tpu.memory_space<vmem>>, vector<8x384xf32>
    tpu.vector_store %arg7[%c0_7, %c0_8], %8 {strides = array<i32>} : memref<8x384xf32, #tpu.memory_space<vmem>>, vector<8x384xf32>,
    return
  }
  func.func @transform_0(%arg0: i32, %arg1: i32, %arg2: i32) -> (i32, i32) {
    %c0_i32 = arith.constant 0 : i32
    return %arg0, %arg2 : i32, i32
  }
  func.func @transform_1(%arg0: i32, %arg1: i32, %arg2: i32) -> (i32, i32) {
    %c0_i32 = arith.constant 0 : i32
    return %arg2, %arg1 : i32, i32
  }
  func.func @transform_2(%arg0: i32, %arg1: i32, %arg2: i32) -> (i32, i32) {
    %c0_i32 = arith.constant 0 : i32
    %c0_i32_0 = arith.constant 0 : i32
    return %c0_i32, %arg1 : i32, i32
  }
  func.func @transform_3(%arg0: i32, %arg1: i32, %arg2: i32) -> (i32, i32) {
    %c0_i32 = arith.constant 0 : i32
    %c0_i32_0 = arith.constant 0 : i32
    %c0_i32_1 = arith.constant 0 : i32
    return %c0_i32, %c0_i32_0 : i32, i32
  }
  func.func @transform_4(%arg0: i32, %arg1: i32, %arg2: i32) -> (i32, i32) {
    %c0_i32 = arith.constant 0 : i32
    return %arg0, %arg1 : i32, i32
  }
}

module attributes {stable_mosaic.version = 11 : i64} {
  func.func @_matmul_kernel(%arg0: i32, %arg1: i32, %arg2: i32, %arg3: memref<8x512xbf16, #tpu.memory_space<vmem>>, %arg4: memref<512x128xbf16, #tpu.memory_space<vmem>>, %arg5: memref<1x128xf32, #tpu.memory_space<vmem>>, %arg6: memref<1x1xf32, #tpu.memory_space<smem>>, %arg7: memref<8x128xf32, #tpu.memory_space<vmem>>) attributes {dimension_semantics = [#tpu.dimension_semantics<parallel>, #tpu.dimension_semantics<parallel>, #tpu.dimension_semantics<arbitrary>], iteration_bounds = array<i64: 1, 1, 1>, scalar_prefetch = 0 : i64, scratch_operands = 0 : i64, tpu.core_type = #tpu.core_type<tc>, window_params = [{transform_indices = @transform_0, window_bounds = array<i64: 8, 512>}, {transform_indices = @transform_1, window_bounds = array<i64: 512, 128>}, {transform_indices = @transform_2, window_bounds = array<i64: 1, 128>}, {transform_indices = @transform_3, window_bounds = array<i64: 1, 1>}, {transform_indices = @transform_4, window_bounds = array<i64: 8, 128>}]} {
    %c0 = arith.constant 0 : index
    %c0_0 = arith.constant 0 : index
    %0 = vector.load %arg3[%c0, %c0_0] : memref<8x512xbf16, #tpu.memory_space<vmem>>, vector<8x512xbf16>
    %c0_1 = arith.constant 0 : index
    %c0_2 = arith.constant 0 : index
    %1 = vector.load %arg4[%c0_1, %c0_2] : memref<512x128xbf16, #tpu.memory_space<vmem>>, vector<512x128xbf16>
    %cst = arith.constant dense<0.000000e+00> : vector<8x128xf32>
    %2 = tpu.matmul %0, %1, %cst {dimension_numbers = #tpu.dot_dimension_numbers<[1], [0], [0], [1], [0, 0, 1, 1], [], []>} : vector<8x512xbf16>, vector<512x128xbf16>, vector<8x128xf32> -> vector<8x128xf32>
    %c0_3 = arith.constant 0 : index
    %c0_4 = arith.constant 0 : index
    %3 = memref.load %arg6[%c0_3, %c0_4] : memref<1x1xf32, #tpu.memory_space<smem>>
    %4 = vector.broadcast %3 : f32 to vector<8x128xf32>
    %5 = arith.mulf %2, %4 : vector<8x128xf32>
    %c0_5 = arith.constant 0 : index
    %c0_6 = arith.constant 0 : index
    %6 = vector.load %arg5[%c0_5, %c0_6] : memref<1x128xf32, #tpu.memory_space<vmem>>, vector<1x128xf32>
    %7 = vector.broadcast %6 : vector<1x128xf32> to vector<8x128xf32>
    %8 = arith.addf %5, %7 : vector<8x128xf32>
    %c0_7 = arith.constant 0 : index
    %c0_8 = arith.constant 0 : index
    %9 = vector.load %arg7[%c0_7, %c0_8] : memref<8x128xf32, #tpu.memory_space<vmem>>, vector<8x128xf32>
    tpu.vector_store %arg7[%c0_7, %c0_8], %8 {strides = array<i32>} : memref<8x128xf32, #tpu.memory_space<vmem>>, vector<8x128xf32>,
    return
  }
  func.func @transform_0(%arg0: i32, %arg1: i32, %arg2: i32) -> (i32, i32) {
    %c0_i32 = arith.constant 0 : i32
    return %arg0, %arg2 : i32, i32
  }
  func.func @transform_1(%arg0: i32, %arg1: i32, %arg2: i32) -> (i32, i32) {
    %c0_i32 = arith.constant 0 : i32
    return %arg2, %arg1 : i32, i32
  }
  func.func @transform_2(%arg0: i32, %arg1: i32, %arg2: i32) -> (i32, i32) {
    %c0_i32 = arith.constant 0 : i32
    %c0_i32_0 = arith.constant 0 : i32
    return %c0_i32, %arg1 : i32, i32
  }
  func.func @transform_3(%arg0: i32, %arg1: i32, %arg2: i32) -> (i32, i32) {
    %c0_i32 = arith.constant 0 : i32
    %c0_i32_0 = arith.constant 0 : i32
    %c0_i32_1 = arith.constant 0 : i32
    return %c0_i32, %c0_i32_0 : i32, i32
  }
  func.func @transform_4(%arg0: i32, %arg1: i32, %arg2: i32) -> (i32, i32) {
    %c0_i32 = arith.constant 0 : i32
    return %arg0, %arg1 : i32, i32
  }
}

module attributes {stable_mosaic.version = 11 : i64} {
  func.func @_matmul_kernel(%arg0: i32, %arg1: i32, %arg2: i32, %arg3: memref<8x384xbf16, #tpu.memory_space<vmem>>, %arg4: memref<384x128xbf16, #tpu.memory_space<vmem>>, %arg5: memref<1x128xf32, #tpu.memory_space<vmem>>, %arg6: memref<1x1xf32, #tpu.memory_space<smem>>, %arg7: memref<8x128xf32, #tpu.memory_space<vmem>>) attributes {dimension_semantics = [#tpu.dimension_semantics<parallel>, #tpu.dimension_semantics<parallel>, #tpu.dimension_semantics<arbitrary>], iteration_bounds = array<i64: 1, 1, 1>, scalar_prefetch = 0 : i64, scratch_operands = 0 : i64, tpu.core_type = #tpu.core_type<tc>, window_params = [{transform_indices = @transform_0, window_bounds = array<i64: 8, 384>}, {transform_indices = @transform_1, window_bounds = array<i64: 384, 128>}, {transform_indices = @transform_2, window_bounds = array<i64: 1, 128>}, {transform_indices = @transform_3, window_bounds = array<i64: 1, 1>}, {transform_indices = @transform_4, window_bounds = array<i64: 8, 128>}]} {
    %c0 = arith.constant 0 : index
    %c0_0 = arith.constant 0 : index
    %0 = vector.load %arg3[%c0, %c0_0] : memref<8x384xbf16, #tpu.memory_space<vmem>>, vector<8x384xbf16>
    %c0_1 = arith.constant 0 : index
    %c0_2 = arith.constant 0 : index
    %1 = vector.load %arg4[%c0_1, %c0_2] : memref<384x128xbf16, #tpu.memory_space<vmem>>, vector<384x128xbf16>
    %cst = arith.constant dense<0.000000e+00> : vector<8x128xf32>
    %2 = tpu.matmul %0, %1, %cst {dimension_numbers = #tpu.dot_dimension_numbers<[1], [0], [0], [1], [0, 0, 1, 1], [], []>} : vector<8x384xbf16>, vector<384x128xbf16>, vector<8x128xf32> -> vector<8x128xf32>
    %c0_3 = arith.constant 0 : index
    %c0_4 = arith.constant 0 : index
    %3 = memref.load %arg6[%c0_3, %c0_4] : memref<1x1xf32, #tpu.memory_space<smem>>
    %4 = vector.broadcast %3 : f32 to vector<8x128xf32>
    %5 = arith.mulf %2, %4 : vector<8x128xf32>
    %c0_5 = arith.constant 0 : index
    %c0_6 = arith.constant 0 : index
    %6 = vector.load %arg5[%c0_5, %c0_6] : memref<1x128xf32, #tpu.memory_space<vmem>>, vector<1x128xf32>
    %7 = vector.broadcast %6 : vector<1x128xf32> to vector<8x128xf32>
    %8 = arith.addf %5, %7 : vector<8x128xf32>
    %c0_7 = arith.constant 0 : index
    %c0_8 = arith.constant 0 : index
    %9 = vector.load %arg7[%c0_7, %c0_8] : memref<8x128xf32, #tpu.memory_space<vmem>>, vector<8x128xf32>
    tpu.vector_store %arg7[%c0_7, %c0_8], %8 {strides = array<i32>} : memref<8x128xf32, #tpu.memory_space<vmem>>, vector<8x128xf32>,
    return
  }
  func.func @transform_0(%arg0: i32, %arg1: i32, %arg2: i32) -> (i32, i32) {
    %c0_i32 = arith.constant 0 : i32
    return %arg0, %arg2 : i32, i32
  }
  func.func @transform_1(%arg0: i32, %arg1: i32, %arg2: i32) -> (i32, i32) {
    %c0_i32 = arith.constant 0 : i32
    return %arg2, %arg1 : i32, i32
  }
  func.func @transform_2(%arg0: i32, %arg1: i32, %arg2: i32) -> (i32, i32) {
    %c0_i32 = arith.constant 0 : i32
    %c0_i32_0 = arith.constant 0 : i32
    return %c0_i32, %arg1 : i32, i32
  }
  func.func @transform_3(%arg0: i32, %arg1: i32, %arg2: i32) -> (i32, i32) {
    %c0_i32 = arith.constant 0 : i32
    %c0_i32_0 = arith.constant 0 : i32
    %c0_i32_1 = arith.constant 0 : i32
    return %c0_i32, %c0_i32_0 : i32, i32
  }
  func.func @transform_4(%arg0: i32, %arg1: i32, %arg2: i32) -> (i32, i32) {
    %c0_i32 = arith.constant 0 : i32
    return %arg0, %arg1 : i32, i32
  }
}

</mosaic_0001>

<bundles_post_ra>
// kernel: discriminator_forward.6
= control target key start
LH: loop header
LB: loop body
LE: loop exit
PB: predicated region body
PF: predicated region fallthrough
CT: control target
= control target key end

     0   :  { %s732_s1 = inlined_call_operand.vmem [shape: bf16[128,128], index: 1, kind: input, shape index: {}]   ;;  %s733_s0 = inlined_call_operand.vmem [shape: bf16[128,128], index: 0, kind: input, shape index: {}]   ;;  %s734_s3 = inlined_call_operand.<no memory space> [shape: f32[1,1], index: 3, kind: input, shape index: {}]   ;;  %s735_s2 = inlined_call_operand.vmem [shape: f32[1,128], index: 2, kind: input, shape index: {}]   ;;  %s736_s4 = inlined_call_operand.vmem [shape: bf16[128,128], index: 4, kind: output, shape index: {}]  }
   0x1   :  { %v577_v0 = vld [vmem:[%s732_s1] sm:$0xff]   ;;  %v578_v1 = vld [vmem:[%s732_s1 + $0x8] sm:$0xff]   ;;  %v579_v2 = vld [vmem:[%s732_s1 + $0x10] sm:$0xff]   ;;  %v669_v16 = vstv %s734_s3 }
   0x2   :  { %529 = vmatprep.subr.bf16.mxu0 %v577_v0  ;;  %561 = vmatprep.subr.bf16.mxu1 %v577_v0  ;;  %v580_v3 = vld [vmem:[%s732_s1 + $0x18] sm:$0xff]   ;;  %v585_v4 = vld [vmem:[%s733_s0] sm:$0xff]   ;;  %v582_v7 = vld [vmem:[%s732_s1 + $0x28] sm:$0xff]  }
   0x3   :  { %530 = vmatpush3.bf16.msra.mxu0 %v577_v0  ;;  %569 = vmatpush3.bf16.msra.mxu1 %v577_v0  ;;  %v586_v5 = vld [vmem:[%s733_s0 + $0x20] sm:$0xff]   ;;  %v583_v8 = vld [vmem:[%s732_s1 + $0x30] sm:$0xff]   ;;  %v584_v9 = vld [vmem:[%s732_s1 + $0x38] sm:$0xff]  }
   0x4   :  { %531 = vmatprep.subr.bf16.mxu0 %v578_v1  ;;  %562 = vmatprep.subr.bf16.mxu1 %v578_v1  ;;  %v581_v6 = vld [vmem:[%s732_s1 + $0x20] sm:$0xff]   ;;  %v587_v10 = vld [vmem:[%s733_s0 + $0x8] sm:$0xff]   ;;  %v589_v12 = vld [vmem:[%s733_s0 + $0x10] sm:$0xff]  }
   0x5   :  { %545 = vmatprep.mubr.bf16.mxu0 %v585_v4  ;;  %553 = vmatprep.mubr.bf16.mxu1 %v586_v5  ;;  %v588_v11 = vld [vmem:[%s733_s0 + $0x28] sm:$0xff]   ;;  %v590_v13 = vld [vmem:[%s733_s0 + $0x30] sm:$0xff]   ;;  %v591_v14 = vld [vmem:[%s733_s0 + $0x18] sm:$0xff]  }
   0x6   :  { %v592_v15 = vld [vmem:[%s733_s0 + $0x38] sm:$0xff]   ;;  %v674_v18 = vld [vmem:[%s735_s2] ss:$0 sm:$0xff] }
   0x7   :  { %532 = vmatpush3.bf16.msra.mxu0 %v578_v1  ;;  %570 = vmatpush3.bf16.msra.mxu1 %v578_v1 }
   0x8   :  { %533 = vmatprep.subr.bf16.mxu0 %v579_v2  ;;  %563 = vmatprep.subr.bf16.mxu1 %v579_v2 }
   0xb   :  { %534 = vmatpush3.bf16.msra.mxu0 %v579_v2  ;;  %571 = vmatpush3.bf16.msra.mxu1 %v579_v2 }
   0xc   :  { %535 = vmatprep.subr.bf16.mxu0 %v580_v3  ;;  %564 = vmatprep.subr.bf16.mxu1 %v580_v3 }
   0xf   :  { %536 = vmatpush3.bf16.msra.mxu0 %v580_v3  ;;  %572 = vmatpush3.bf16.msra.mxu1 %v580_v3 }
  0x10   :  { %537 = vmatprep.subr.bf16.mxu0 %v581_v6  ;;  %565 = vmatprep.subr.bf16.mxu1 %v581_v6 }
  0x13   :  { %538 = vmatpush3.bf16.msra.mxu0 %v581_v6  ;;  %573 = vmatpush3.bf16.msra.mxu1 %v581_v6 }
  0x14   :  { %539 = vmatprep.subr.bf16.mxu0 %v582_v7  ;;  %566 = vmatprep.subr.bf16.mxu1 %v582_v7 }
  0x17   :  { %540 = vmatpush3.bf16.msra.mxu0 %v582_v7  ;;  %574 = vmatpush3.bf16.msra.mxu1 %v582_v7 }
  0x18   :  { %541 = vmatprep.subr.bf16.mxu0 %v583_v8  ;;  %567 = vmatprep.subr.bf16.mxu1 %v583_v8 }
  0x1b   :  { %542 = vmatpush3.bf16.msra.mxu0 %v583_v8  ;;  %575 = vmatpush3.bf16.msra.mxu1 %v583_v8 }
  0x1c   :  { %543 = vmatprep.subr.bf16.mxu0 %v584_v9  ;;  %568 = vmatprep.subr.bf16.mxu1 %v584_v9 }
  0x1f   :  { %544 = vmatpush3.bf16.msra.mxu0 %v584_v9  ;;  %576 = vmatpush3.bf16.msra.mxu1 %v584_v9 }
  0x22   :  { %546 = vmatmul.mubr.bf16.vlgmr.msra.gmra.mrb[0].mxu0 %v587_v10  ;;  %554 = vmatmul.mubr.bf16.vlgmr.msra.gmra.mrb[0].mxu1 %v588_v11 }
  0x23   :  { %549 = vmatprep.mubr.bf16.mxu0 %v589_v12  ;;  %557 = vmatprep.mubr.bf16.mxu1 %v590_v13 }
  0x2a   :  { %550 = vmatmul.mubr.bf16.gmra.mrb[4].mxu0 %v591_v14  ;;  %558 = vmatmul.mubr.bf16.gmra.mrb[4].mxu1 %v592_v15 }
  0xf5   :  { %v547_v17 = vpop.f32.mrb[0].mxu0  ;;  %v555_v19 = vpop.f32.mrb[0].mxu1 }
  0xf6   :  { %v248_v20 = vmul.f32 %v547_v17, %v669_v16  ;;  %v256_v21 = vmul.f32 %v555_v19, %v669_v16  ;;  %v181_v22 = vpop.f32.mrb[1].mxu0  ;;  %v213_v23 = vpop.f32.mrb[1].mxu1 }
  0xf7   :  { %v246_v24 = vmul.f32 %v669_v16, %v181_v22  ;;  %v254_v25 = vmul.f32 %v669_v16, %v213_v23  ;;  %v548_v26 = vpop.f32.mrb[2].mxu0  ;;  %v556_v27 = vpop.f32.mrb[2].mxu1 }
  0xf8   :  { %v271_v28 = vadd.f32 %v674_v18, %v248_v20  ;;  %v279_v29 = vadd.f32 %v674_v18, %v256_v21  ;;  %v249_v30 = vmul.f32 %v548_v26, %v669_v16  ;;  %v257_v31 = vmul.f32 %v556_v27, %v669_v16  ;;  %v184_v32 = vpop.f32.mrb[3].mxu0  ;;  %v216_v33 = vpop.f32.mrb[3].mxu1 }
  0xf9   :  { %v269_v34 = vadd.f32 %v674_v18, %v246_v24  ;;  %v277_v35 = vadd.f32 %v674_v18, %v254_v25  ;;  %v247_v36 = vmul.f32 %v669_v16, %v184_v32  ;;  %v255_v37 = vmul.f32 %v669_v16, %v216_v33 }
  0xfa   :  { %vm287_vm0 = vcmp.ge.f32.partialorder %v271_v28, 0.0  ;;  %v303_v38 = vmul.f32 0.01, %v271_v28  ;;  %vm295_vm1 = vcmp.ge.f32.partialorder %v279_v29, 0.0  ;;  %v311_v39 = vmul.f32 0.01, %v279_v29 }
  0xfb   :  { %vm285_vm2 = vcmp.ge.f32.partialorder %v269_v34, 0.0  ;;  %v301_v40 = vmul.f32 0.01, %v269_v34  ;;  %vm293_vm3 = vcmp.ge.f32.partialorder %v277_v35, 0.0  ;;  %v309_v41 = vmul.f32 0.01, %v277_v35 }
  0xfc   :  { %v319_v42 = vsel %vm287_vm0, %v271_v28, %v303_v38  ;;  %v327_v43 = vsel %vm295_vm1, %v279_v29, %v311_v39  ;;  %v272_v44 = vadd.f32 %v674_v18, %v249_v30  ;;  %v280_v45 = vadd.f32 %v674_v18, %v257_v31 }
  0xfd   :  { %v317_v46 = vsel %vm285_vm2, %v269_v34, %v301_v40  ;;  %v325_v47 = vsel %vm293_vm3, %v277_v35, %v309_v41  ;;  %v270_v48 = vadd.f32 %v674_v18, %v247_v36  ;;  %v278_v49 = vadd.f32 %v674_v18, %v255_v37  ;;  %v551_v50 = vpop.f32.mrb[4].mxu0  ;;  %v559_v51 = vpop.f32.mrb[4].mxu1 }
  0xfe   :  { %vm288_vm4 = vcmp.ge.f32.partialorder %v272_v44, 0.0  ;;  %v304_v52 = vmul.f32 0.01, %v272_v44  ;;  %vm296_vm5 = vcmp.ge.f32.partialorder %v280_v45, 0.0  ;;  %v312_v53 = vmul.f32 0.01, %v280_v45 }
  0xff   :  { %vm286_vm6 = vcmp.ge.f32.partialorder %v270_v48, 0.0  ;;  %v302_v54 = vmul.f32 0.01, %v270_v48  ;;  %vm294_vm7 = vcmp.ge.f32.partialorder %v278_v49, 0.0  ;;  %v310_v55 = vmul.f32 0.01, %v278_v49 }
 0x100   :  { %v320_v56 = vsel %vm288_vm4, %v272_v44, %v304_v52  ;;  %v328_v57 = vsel %vm296_vm5, %v280_v45, %v312_v53  ;;  %v252_v58 = vmul.f32 %v551_v50, %v669_v16  ;;  %v260_v59 = vmul.f32 %v559_v51, %v669_v16  ;;  %v197_v60 = vpop.f32.mrb[5].mxu0  ;;  %v229_v61 = vpop.f32.mrb[5].mxu1 }
 0x101   :  { %v474_v62 = vpack.c.bf16 %v320_v56, %v319_v42  ;;  %v494_v63 = vpack.c.bf16 %v328_v57, %v327_v43  ;;  %v318_v0 = vsel %vm286_vm6, %v270_v48, %v302_v54  ;;  %v326_v1 = vsel %vm294_vm7, %v278_v49, %v310_v55  ;;  %v552_v2 = vpop.f32.mrb[6].mxu0  ;;  %v560_v3 = vpop.f32.mrb[6].mxu1 }
 0x102   :  { %v469_v4 = vpack.c.bf16 %v318_v0, %v317_v46  ;;  %v489_v5 = vpack.c.bf16 %v326_v1, %v325_v47  ;;  %v275_v6 = vadd.f32 %v674_v18, %v252_v58  ;;  %v283_v7 = vadd.f32 %v674_v18, %v260_v59  ;;  %v200_v8 = vpop.f32.mrb[7].mxu0  ;;  %v232_v9 = vpop.f32.mrb[7].mxu1 }
 0x103   :  { %506 = vst [vmem:[%s736_s4 + $0x8] sm:$0xff] %v474_v62   ;;  %510 = vst [vmem:[%s736_s4 + $0x28] sm:$0xff] %v494_v63   ;;  %v250_v10 = vmul.f32 %v669_v16, %v197_v60  ;;  %v258_v11 = vmul.f32 %v669_v16, %v229_v61  ;;  %v253_v12 = vmul.f32 %v552_v2, %v669_v16 }
 0x104   :  { %v261_v13 = vmul.f32 %v560_v3, %v669_v16  ;;  %470 = vst [vmem:[%s736_s4] sm:$0xff] %v469_v4   ;;  %509 = vst [vmem:[%s736_s4 + $0x20] sm:$0xff] %v489_v5   ;;  %vm291_vm8 = vcmp.ge.f32.partialorder %v275_v6, 0.0  ;;  %v307_v14 = vmul.f32 0.01, %v275_v6  ;;  %vm299_vm9 = vcmp.ge.f32.partialorder %v283_v7, 0.0 }
 0x105   :  { %v315_v15 = vmul.f32 0.01, %v283_v7  ;;  %v273_v17 = vadd.f32 %v674_v18, %v250_v10  ;;  %v276_v19 = vadd.f32 %v674_v18, %v253_v12  ;;  %v281_v21 = vadd.f32 %v674_v18, %v258_v11 }
 0x106   :  { %v284_v20 = vadd.f32 %v674_v18, %v261_v13  ;;  %v251_v22 = vmul.f32 %v669_v16, %v200_v8  ;;  %v259_v23 = vmul.f32 %v669_v16, %v232_v9  ;;  %v323_v24 = vsel %vm291_vm8, %v275_v6, %v307_v14 }
 0x107   :  { %v331_v25 = vsel %vm299_vm9, %v283_v7, %v315_v15  ;;  %vm292_vm10 = vcmp.ge.f32.partialorder %v276_v19, 0.0  ;;  %v308_v26 = vmul.f32 0.01, %v276_v19  ;;  %vm289_vm12 = vcmp.ge.f32.partialorder %v273_v17, 0.0 }
 0x108   :  { %vm300_vm11 = vcmp.ge.f32.partialorder %v284_v20, 0.0  ;;  %v316_v27 = vmul.f32 0.01, %v284_v20  ;;  %v305_v28 = vmul.f32 0.01, %v273_v17  ;;  %v274_v29 = vadd.f32 %v674_v18, %v251_v22 }
 0x109   :  { %v282_v30 = vadd.f32 %v674_v18, %v259_v23  ;;  %vm297_vm13 = vcmp.ge.f32.partialorder %v281_v21, 0.0  ;;  %v313_v31 = vmul.f32 0.01, %v281_v21  ;;  %v324_v32 = vsel %vm292_vm10, %v276_v19, %v308_v26 }
 0x10a   :  { %v332_v33 = vsel %vm300_vm11, %v284_v20, %v316_v27  ;;  %v484_v34 = vpack.c.bf16 %v324_v32, %v323_v24  ;;  %vm290_vm14 = vcmp.ge.f32.partialorder %v274_v29, 0.0  ;;  %v306_v16 = vmul.f32 0.01, %v274_v29 }
 0x10b   :  { %v504_v35 = vpack.c.bf16 %v332_v33, %v331_v25  ;;  %vm298_vm15 = vcmp.ge.f32.partialorder %v282_v30, 0.0  ;;  %v314_v36 = vmul.f32 0.01, %v282_v30  ;;  %v321_v37 = vsel %vm289_vm12, %v273_v17, %v305_v28 }
 0x10c   :  { %508 = vst [vmem:[%s736_s4 + $0x18] sm:$0xff] %v484_v34   ;;  %v322_v18 = vsel %vm290_vm14, %v274_v29, %v306_v16  ;;  %v329_v38 = vsel %vm297_vm13, %v281_v21, %v313_v31 }
 0x10d   :  { %512 = vst [vmem:[%s736_s4 + $0x38] sm:$0xff] %v504_v35   ;;  %v479_v39 = vpack.c.bf16 %v322_v18, %v321_v37  ;;  %v330_v40 = vsel %vm298_vm15, %v282_v30, %v314_v36 }
 0x10e   :  { %v499_v41 = vpack.c.bf16 %v330_v40, %v329_v38 }
 0x10f   :  { %507 = vst [vmem:[%s736_s4 + $0x10] sm:$0xff] %v479_v39  }
 0x110   :  { %511 = vst [vmem:[%s736_s4 + $0x30] sm:$0xff] %v499_v41  }

// kernel: discriminator_forward.7
= control target key start
LH: loop header
LB: loop body
LE: loop exit
PB: predicated region body
PF: predicated region fallthrough
CT: control target
= control target key end

     0   :  { %s338_s1 = inlined_call_operand.vmem [shape: bf16[128,128], index: 1, kind: input, shape index: {}]   ;;  %s339_s0 = inlined_call_operand.vmem [shape: bf16[32,128], index: 0, kind: input, shape index: {}]   ;;  %s340_s3 = inlined_call_operand.<no memory space> [shape: f32[1,1], index: 3, kind: input, shape index: {}]   ;;  %s341_s2 = inlined_call_operand.vmem [shape: f32[1,128], index: 2, kind: input, shape index: {}]   ;;  %s342_s4 = inlined_call_operand.vmem [shape: bf16[32,128], index: 4, kind: output, shape index: {}]  }
   0x1   :  { %v261_v0 = vld [vmem:[%s338_s1] sm:$0xff]   ;;  %v262_v1 = vld [vmem:[%s338_s1 + $0x8] sm:$0xff]   ;;  %v263_v2 = vld [vmem:[%s338_s1 + $0x10] sm:$0xff]   ;;  %v149_v10 = vstv %s340_s3 }
   0x2   :  { %241 = vmatprep.subr.bf16.mxu0 %v261_v0  ;;  %v264_v3 = vld [vmem:[%s338_s1 + $0x18] sm:$0xff]   ;;  %v269_v4 = vld [vmem:[%s339_s0] sm:$0xff]   ;;  %v266_v6 = vld [vmem:[%s338_s1 + $0x28] sm:$0xff]  }
   0x3   :  { %242 = vmatpush3.bf16.msra.mxu0 %v261_v0  ;;  %257 = vmatprep.mubr.bf16.mxu0 %v269_v4  ;;  %v265_v5 = vld [vmem:[%s338_s1 + $0x20] sm:$0xff]   ;;  %v267_v7 = vld [vmem:[%s338_s1 + $0x30] sm:$0xff]   ;;  %v268_v8 = vld [vmem:[%s338_s1 + $0x38] sm:$0xff]  }
   0x4   :  { %243 = vmatprep.subr.bf16.mxu0 %v262_v1  ;;  %v270_v9 = vld [vmem:[%s339_s0 + $0x8] sm:$0xff]   ;;  %v211_v12 = vld [vmem:[%s341_s2] ss:$0 sm:$0xff] }
   0x7   :  { %244 = vmatpush3.bf16.msra.mxu0 %v262_v1 }
   0x8   :  { %245 = vmatprep.subr.bf16.mxu0 %v263_v2 }
   0xb   :  { %246 = vmatpush3.bf16.msra.mxu0 %v263_v2 }
   0xc   :  { %247 = vmatprep.subr.bf16.mxu0 %v264_v3 }
   0xf   :  { %248 = vmatpush3.bf16.msra.mxu0 %v264_v3 }
  0x10   :  { %249 = vmatprep.subr.bf16.mxu0 %v265_v5 }
  0x13   :  { %250 = vmatpush3.bf16.msra.mxu0 %v265_v5 }
  0x14   :  { %251 = vmatprep.subr.bf16.mxu0 %v266_v6 }
  0x17   :  { %252 = vmatpush3.bf16.msra.mxu0 %v266_v6 }
  0x18   :  { %253 = vmatprep.subr.bf16.mxu0 %v267_v7 }
  0x1b   :  { %254 = vmatpush3.bf16.msra.mxu0 %v267_v7 }
  0x1c   :  { %255 = vmatprep.subr.bf16.mxu0 %v268_v8 }
  0x1f   :  { %256 = vmatpush3.bf16.msra.mxu0 %v268_v8 }
  0x22   :  { %258 = vmatmul.mubr.bf16.vlgmr.msra.gmra.mrb[0].mxu0 %v270_v9 }
  0xf5   :  { %v259_v11 = vpop.f32.mrb[0].mxu0 }
  0xf6   :  { %v152_v13 = vmul.f32 %v259_v11, %v149_v10  ;;  %v133_v14 = vpop.f32.mrb[1].mxu0 }
  0xf7   :  { %v150_v15 = vmul.f32 %v149_v10, %v133_v14  ;;  %v260_v16 = vpop.f32.mrb[2].mxu0 }
  0xf8   :  { %v163_v17 = vadd.f32 %v211_v12, %v152_v13  ;;  %v153_v18 = vmul.f32 %v260_v16, %v149_v10  ;;  %v136_v19 = vpop.f32.mrb[3].mxu0 }
  0xf9   :  { %v161_v20 = vadd.f32 %v211_v12, %v150_v15  ;;  %v151_v21 = vmul.f32 %v149_v10, %v136_v19 }
  0xfa   :  { %v171_v22 = vmul.f32 0.01, %v163_v17  ;;  %v164_v23 = vadd.f32 %v211_v12, %v153_v18  ;;  %vm167_vm0 = vcmp.ge.f32.partialorder %v163_v17, 0.0 }
  0xfb   :  { %v169_v24 = vmul.f32 0.01, %v161_v20  ;;  %v162_v25 = vadd.f32 %v211_v12, %v151_v21  ;;  %vm165_vm1 = vcmp.ge.f32.partialorder %v161_v20, 0.0 }
  0xfc   :  { %vm168_vm2 = vcmp.ge.f32.partialorder %v164_v23, 0.0  ;;  %v172_v26 = vmul.f32 0.01, %v164_v23  ;;  %v175_v28 = vsel %vm167_vm0, %v163_v17, %v171_v22 }
  0xfd   :  { %vm166_vm3 = vcmp.ge.f32.partialorder %v162_v25, 0.0  ;;  %v170_v27 = vmul.f32 0.01, %v162_v25  ;;  %v173_v30 = vsel %vm165_vm1, %v161_v20, %v169_v24 }
  0xfe   :  { %v176_v29 = vsel %vm168_vm2, %v164_v23, %v172_v26 }
  0xff   :  { %v228_v31 = vpack.c.bf16 %v176_v29, %v175_v28  ;;  %v174_v32 = vsel %vm166_vm3, %v162_v25, %v170_v27 }
 0x100   :  { %v223_v33 = vpack.c.bf16 %v174_v32, %v173_v30 }
 0x101   :  { %230 = vst [vmem:[%s342_s4 + $0x8] sm:$0xff] %v228_v31  }
 0x102   :  { %224 = vst [vmem:[%s342_s4] sm:$0xff] %v223_v33  }

// kernel: discriminator_forward.8
= control target key start
LH: loop header
LB: loop body
LE: loop exit
PB: predicated region body
PF: predicated region fallthrough
CT: control target
= control target key end

     0   :  { %s359_s1 = inlined_call_operand.vmem [shape: bf16[256,128], index: 1, kind: input, shape index: {}]   ;;  %s360_s0 = inlined_call_operand.vmem [shape: bf16[8,256], index: 0, kind: input, shape index: {}]   ;;  %s361_s3 = inlined_call_operand.<no memory space> [shape: f32[1,1], index: 3, kind: input, shape index: {}]   ;;  %s362_s2 = inlined_call_operand.vmem [shape: f32[1,128], index: 2, kind: input, shape index: {}]   ;;  %s363_s4 = inlined_call_operand.vmem [shape: bf16[8,128], index: 4, kind: output, shape index: {}]  }
   0x1   :  { %v256_v0 = vld [vmem:[%s359_s1 + $0x40] sm:$0xff]   ;;  %v258_v2 = vld [vmem:[%s359_s1 + $0x48] sm:$0xff]   ;;  %v260_v4 = vld [vmem:[%s359_s1 + $0x50] sm:$0xff]   ;;  %v196_v21 = vstv %s361_s3 }
   0x2   :  { %v257_v1 = vld [vmem:[%s359_s1] sm:$0xff]   ;;  %234 = vmatprep.subr.bf16.mxu0 %v256_v0  ;;  %v259_v3 = vld [vmem:[%s359_s1 + $0x8] sm:$0xff]   ;;  %v261_v5 = vld [vmem:[%s359_s1 + $0x10] sm:$0xff]  }
   0x3   :  { %235 = vmatpush3.bf16.msra.mxu0 %v257_v1  ;;  %v262_v6 = vld [vmem:[%s359_s1 + $0x58] sm:$0xff]   ;;  %v264_v8 = vld [vmem:[%s359_s1 + $0x60] sm:$0xff]   ;;  %v266_v10 = vld [vmem:[%s359_s1 + $0x68] sm:$0xff]  }
   0x4   :  { %236 = vmatprep.subr.bf16.mxu0 %v258_v2  ;;  %v263_v7 = vld [vmem:[%s359_s1 + $0x18] sm:$0xff]   ;;  %v265_v9 = vld [vmem:[%s359_s1 + $0x20] sm:$0xff]   ;;  %v267_v13 = vld [vmem:[%s359_s1 + $0x28] sm:$0xff]  }
   0x5   :  { %v19_v11 = vld [vmem:[%s360_s0] sm:$0xff]  ;;  %v268_v14 = vld [vmem:[%s359_s1 + $0x70] sm:$0xff]   ;;  %v270_v16 = vld [vmem:[%s359_s1 + $0x78] sm:$0xff]  }
   0x6   :  { %v216_v12 = vcombine.high %v19_v11, %v19_v11  ;;  %v269_v15 = vld [vmem:[%s359_s1 + $0x30] sm:$0xff]   ;;  %v271_v17 = vld [vmem:[%s359_s1 + $0x38] sm:$0xff]   ;;  %v215_v18 = vcombine.low %v19_v11, %v19_v11  ;;  %v233_v24 = vld [vmem:[%s362_s2] ss:$0 sm:$0xff] }
   0x7   :  { %237 = vmatpush3.bf16.msra.mxu0 %v259_v3 }
   0x8   :  { %238 = vmatprep.subr.bf16.mxu0 %v260_v4  ;;  %187 = vmatprep.mubr.bf16.mxu0 %v216_v12 }
   0xb   :  { %239 = vmatpush3.bf16.msra.mxu0 %v261_v5 }
   0xc   :  { %240 = vmatprep.subr.bf16.mxu0 %v262_v6 }
   0xf   :  { %241 = vmatpush3.bf16.msra.mxu0 %v263_v7 }
  0x10   :  { %242 = vmatprep.subr.bf16.mxu0 %v264_v8 }
  0x13   :  { %243 = vmatpush3.bf16.msra.mxu0 %v265_v9 }
  0x14   :  { %244 = vmatprep.subr.bf16.mxu0 %v266_v10 }
  0x17   :  { %245 = vmatpush3.bf16.msra.mxu0 %v267_v13 }
  0x18   :  { %246 = vmatprep.subr.bf16.mxu0 %v268_v14 }
  0x1b   :  { %247 = vmatpush3.bf16.msra.mxu0 %v269_v15 }
  0x1c   :  { %248 = vmatprep.subr.bf16.mxu0 %v270_v16 }
  0x1f   :  { %249 = vmatpush3.bf16.msra.mxu0 %v271_v17 }
  0x22   :  { %188 = vmatmul.mubr.bf16.vlgmr.msra.gmra.mrb[0].mxu0 %v215_v18 }
  0xf5   :  { %v250_v19 = vpop.f32.mrb[0].mxu0 }
  0xf6   :  { %v251_v20 = vpop.f32.mrb[1].mxu0 }
  0xf7   :  { %v252_v22 = vadd.f32 %v251_v20, %v250_v19  ;;  %v253_v23 = vpop.f32.mrb[2].mxu0 }
  0xf8   :  { %v254_v25 = vpop.f32.mrb[3].mxu0 }
  0xf9   :  { %v197_v26 = vmul.f32 %v252_v22, %v196_v21 }
  0xfb   :  { %v205_v27 = vadd.f32 %v233_v24, %v197_v26 }
  0xfd   :  { %vm206_vm0 = vcmp.ge.f32.partialorder %v205_v27, 0.0  ;;  %v207_v28 = vmul.f32 0.01, %v205_v27 }
  0xff   :  { %v208_v29 = vsel %vm206_vm0, %v205_v27, %v207_v28 }
 0x100   :  { %v209_v30 = vpack.c.bf16 %v208_v29, %v208_v29 }
 0x102   :  { %210 = vst [vmem:[%s363_s4] sm:$0xf] %v209_v30 }

// kernel: discriminator_forward.10
= control target key start
LH: loop header
LB: loop body
LE: loop exit
PB: predicated region body
PF: predicated region fallthrough
CT: control target
= control target key end

     0   :  { %s1178_s0 = inlined_call_operand.vmem [shape: bf16[8,128], index: 0, kind: input, shape index: {}]   ;;  %s1179_s1 = inlined_call_operand.vmem [shape: bf16[128,768], index: 1, kind: input, shape index: {}]   ;;  %s1180_s2 = inlined_call_operand.vmem [shape: f32[1,768], index: 2, kind: input, shape index: {}]   ;;  %s1181_s3 = inlined_call_operand.<no memory space> [shape: f32[1,1], index: 3, kind: input, shape index: {}]   ;;  %s1182_s4 = inlined_call_operand.vmem [shape: f32[8,768], index: 4, kind: output, shape index: {}]  }
   0x1   :  { %9 = sst [smem:[#allocation2]] %s1181_s3 }
   0x2   :  { %s1013_s17 = smov 0   ;;  %s1015_s18 = smov 0  }
   0x3   :  { %s1017_s19 = smov 0   ;;  %s1019_s20 = smov 0  }
   0x4   :  { %s1021_s21 = smov 0  }
   0x5 LB: > { %s30_s3 = sadd.s32 1, %s976_s20  ;;  %p78_p1 = scmp.ne.s32.totalorder %s968_s18, %s964_s17  ;;  %s980_s21 = sphi %s1021_s21, %s15_s21   ;;  %s976_s20 = sphi %s1019_s20, %s1186_s20   ;;  %s972_s19 = sphi %s1017_s19, %s1185_s19   ;;  %s968_s18 = sphi %s1015_s18, %s1184_s18   ;;  %s964_s17 = sphi %s1013_s17, %s1183_s17  }
   0x6   : > { %p32_p0 = scmp.ge.s32.totalorder %s30_s3, 2  ;;  %p79_p2 = scmp.eq.s32.totalorder %s980_s21, 0 }
   0x7   : > { %s71_s23 = sadd.s32 1, %s968_s18  ;;  %p773_p5 = scmp.ge.s32.totalorder %s980_s21, 2 }
   0x8   : > { %s1188_s3 = smov (%p32_p0, %s30_s3), 0  ;;  %p80_p3 = por %p79_p2, %p78_p1 }
   0x9   : > { %s67_s22 = ssub.s32 %s976_s20, %s1188_s3  ;;  %192 = sbr.rel (%p773_p5) target bundleno = 39 (0x27), region = 24 }
   0xa   : > { %p69_p4 = scmp.eq.s32.totalorder %s67_s22, 0 }
   0xc   : > { %s1048_s24 = scalar_select %p69_p4, %s968_s18, %s71_s23  }
  0x10   : > { %195 = sbr.rel (!%p80_p3) target bundleno = 39 (0x27), region = 28  ;;  %s197_s25 = sand.u32 (%p80_p3), 1, %s968_s18  }
  0x11   : > { %s835_s26 = smul.u32 (%p80_p3), 12, %s976_s20 }
  0x12   : > { %s865_s27 = smul.u32 (%p80_p3), 192, %s197_s25 }
  0x13   : > { %s1056_s30 = scalar_lea.vmem (%p80_p3), %s1179_s1, %s835_s26 }
  0x14   : > { %v220_v0 = vld [vmem:[%s1056_s30] sm:$0xff] (%p80_p3)  ;;  %v222_v1 = vld [vmem:[%s1056_s30 + $0x18] sm:$0xff] (%p80_p3)  ;;  %v224_v2 = vld [vmem:[%s1056_s30 + $0x30] sm:$0xff] (%p80_p3)  ;;  %s1061_s5 = scalar_lea.vmem (%p80_p3), [#allocation3], %s865_s27 }
  0x15   : > { %221 = vst [vmem:[%s1061_s5] sm:$0xff] (%p80_p3), %v220_v0  ;;  %223 = vst [vmem:[%s1061_s5 + $0xc] sm:$0xff] (%p80_p3), %v222_v1  ;;  %v226_v3 = vld [vmem:[%s1056_s30 + $0x48] sm:$0xff] (%p80_p3)  ;;  %v228_v4 = vld [vmem:[%s1056_s30 + $0x60] sm:$0xff] (%p80_p3) }
  0x16   : > { %225 = vst [vmem:[%s1061_s5 + $0x18] sm:$0xff] (%p80_p3), %v224_v2  ;;  %v230_v5 = vld [vmem:[%s1056_s30 + $0x78] sm:$0xff] (%p80_p3)  ;;  %227 = vst [vmem:[%s1061_s5 + $0x24] sm:$0xff] (%p80_p3), %v226_v3  ;;  %v232_v6 = vld [vmem:[%s1056_s30 + $0x90] sm:$0xff] (%p80_p3) }
  0x17   : > { %229 = vst [vmem:[%s1061_s5 + $0x30] sm:$0xff] %v228_v4  ;;  %231 = vst [vmem:[%s1061_s5 + $0x3c] sm:$0xff] %v230_v5  ;;  %v234_v7 = vld [vmem:[%s1056_s30 + $0xa8] sm:$0xff]  ;;  %v236_v8 = vld [vmem:[%s1056_s30 + $0xc0] sm:$0xff] }
  0x18   : > { %233 = vst [vmem:[%s1061_s5 + $0x48] sm:$0xff] %v232_v6  ;;  %235 = vst [vmem:[%s1061_s5 + $0x54] sm:$0xff] %v234_v7  ;;  %v238_v9 = vld [vmem:[%s1056_s30 + $0xd8] sm:$0xff]  ;;  %v240_v10 = vld [vmem:[%s1056_s30 + $0xf0] sm:$0xff] }
  0x19   : > { %237 = vst [vmem:[%s1061_s5 + $0x60] sm:$0xff] %v236_v8  ;;  %v242_v11 = vld [vmem:[%s1056_s30 + $0x108] sm:$0xff]  ;;  %239 = vst [vmem:[%s1061_s5 + $0x6c] sm:$0xff] %v238_v9  ;;  %v244_v12 = vld [vmem:[%s1056_s30 + $0x120] sm:$0xff] }
  0x1a   : > { %241 = vst [vmem:[%s1061_s5 + $0x78] sm:$0xff] %v240_v10  ;;  %243 = vst [vmem:[%s1061_s5 + $0x84] sm:$0xff] %v242_v11  ;;  %v246_v13 = vld [vmem:[%s1056_s30 + $0x138] sm:$0xff]  ;;  %v248_v14 = vld [vmem:[%s1056_s30 + $0x150] sm:$0xff] }
  0x1b   : > { %245 = vst [vmem:[%s1061_s5 + $0x90] sm:$0xff] %v244_v12  ;;  %247 = vst [vmem:[%s1061_s5 + $0x9c] sm:$0xff] %v246_v13  ;;  %v250_v15 = vld [vmem:[%s1056_s30 + $0x168] sm:$0xff]  ;;  %v777_v17 = vld [vmem:[%s1056_s30 + $0x20] sm:$0xf] }
  0x1c   : > { %249 = vst [vmem:[%s1061_s5 + $0xa8] sm:$0xff] %v248_v14  ;;  %v775_v16 = vld [vmem:[%s1056_s30 + $0x8] sm:$0xf]  ;;  %251 = vst [vmem:[%s1061_s5 + $0xb4] sm:$0xff] %v250_v15  ;;  %v779_v18 = vld [vmem:[%s1056_s30 + $0x38] sm:$0xf] }
  0x1d   : > { %776 = vst [vmem:[%s1061_s5 + $0x8] sm:$0xf] %v775_v16  ;;  %778 = vst [vmem:[%s1061_s5 + $0x14] sm:$0xf] %v777_v17  ;;  %v781_v19 = vld [vmem:[%s1056_s30 + $0x50] sm:$0xf] }
  0x1e   : > { %v783_v20 = vld [vmem:[%s1056_s30 + $0x68] sm:$0xf]  ;;  %780 = vst [vmem:[%s1061_s5 + $0x20] sm:$0xf] %v779_v18  ;;  %782 = vst [vmem:[%s1061_s5 + $0x2c] sm:$0xf] %v781_v19 }
  0x1f   : > { %784 = vst [vmem:[%s1061_s5 + $0x38] sm:$0xf] %v783_v20  ;;  %v785_v21 = vld [vmem:[%s1056_s30 + $0x80] sm:$0xf]  ;;  %v787_v22 = vld [vmem:[%s1056_s30 + $0x98] sm:$0xf] }
  0x20   : > { %v789_v23 = vld [vmem:[%s1056_s30 + $0xb0] sm:$0xf]  ;;  %786 = vst [vmem:[%s1061_s5 + $0x44] sm:$0xf] %v785_v21  ;;  %788 = vst [vmem:[%s1061_s5 + $0x50] sm:$0xf] %v787_v22 }
  0x21   : > { %790 = vst [vmem:[%s1061_s5 + $0x5c] sm:$0xf] %v789_v23  ;;  %v791_v24 = vld [vmem:[%s1056_s30 + $0xc8] sm:$0xf]  ;;  %v793_v25 = vld [vmem:[%s1056_s30 + $0xe0] sm:$0xf] }
  0x22   : > { %v795_v26 = vld [vmem:[%s1056_s30 + $0xf8] sm:$0xf]  ;;  %792 = vst [vmem:[%s1061_s5 + $0x68] sm:$0xf] %v791_v24  ;;  %794 = vst [vmem:[%s1061_s5 + $0x74] sm:$0xf] %v793_v25 }
  0x23   : > { %796 = vst [vmem:[%s1061_s5 + $0x80] sm:$0xf] %v795_v26  ;;  %v797_v27 = vld [vmem:[%s1056_s30 + $0x110] sm:$0xf]  ;;  %v799_v28 = vld [vmem:[%s1056_s30 + $0x128] sm:$0xf] }
  0x24   : > { %v801_v29 = vld [vmem:[%s1056_s30 + $0x140] sm:$0xf]  ;;  %798 = vst [vmem:[%s1061_s5 + $0x8c] sm:$0xf] %v797_v27  ;;  %800 = vst [vmem:[%s1061_s5 + $0x98] sm:$0xf] %v799_v28 }
  0x25   : > { %802 = vst [vmem:[%s1061_s5 + $0xa4] sm:$0xf] %v801_v29  ;;  %v803_v30 = vld [vmem:[%s1056_s30 + $0x158] sm:$0xf]  ;;  %v805_v31 = vld [vmem:[%s1056_s30 + $0x170] sm:$0xf] }
  0x26   : > { %804 = vst [vmem:[%s1061_s5 + $0xb0] sm:$0xf] %v803_v30  ;;  %806 = vst [vmem:[%s1061_s5 + $0xbc] sm:$0xf] %v805_v31 }
  0x27 PF: > { %p807_p6 = scmp.ge.s32.totalorder %s980_s21, 1  ;;  %p303_p7 = scmp.lt.s32.totalorder %s980_s21, 3 }
  0x29   : > { %p304_p8 = pnand %p807_p6, %p303_p7 }
  0x2a   : > { %s310_s6 = sand.u32 (!%p304_p8), 1, %s964_s17   ;;  %v982_v32 = vmov (!%p304_p8), 0.0   ;;  %vm983_vm0 = vmmov (!%p304_p8), 0   ;;  %v984_v33 = vmov (!%p304_p8), 0   ;;  %v375_v58 = vld [vmem:[%s1178_s0] sm:$0xf] (!%p304_p8)  ;;  %v624_v59 = vlaneseq (!%p304_p8) }
  0x2b   : > { %307 = sbr.rel (%p304_p8) target bundleno = 298 (0x12a), region = 58  ;;  %845 = vmatprep.subr.bf16.mxu1 (!%p304_p8), %v982_v32  ;;  %861 = vmatprep.mubr.msk.bf16.mxu1 (!%p304_p8), %vm983_vm0, %v982_v32  ;;  %s617_s12 = sld [smem:[#allocation2]] (!%p304_p8) }
  0x2c   : > { %s866_s7 = smul.u32 (!%p304_p8), 192, %s310_s6  ;;  %568 = vmatprep.mubr.bf16.mxu0 (!%p304_p8), %v984_v33  ;;  %v625_v60 = vshrl.u32 (!%p304_p8), %v624_v59, 7 }
  0x2d   : > { %s359_s11 = smul.u32 (!%p304_p8), 3, %s972_s19 }
  0x2e   : > { %s1127_s8 = scalar_lea.vmem (!%p304_p8), [#allocation3], %s866_s7  ;;  %v634_v61 = vsub.s32 (!%p304_p8), 2, %v625_v60  ;;  %v626_v62 = vsub.s32 (!%p304_p8), 0, %v625_v60  ;;  %v630_v0 = vsub.s32 (!%p304_p8), 1, %v625_v60 }
  0x2f   : > { %v910_v34 = vld [vmem:[%s1127_s8 + $0x4] ss:$12 sps:$4 sm:$0xff] (!%p304_p8)   ;;  %v912_v35 = vld [vmem:[%s1127_s8 + $0x8] ss:$12 sps:$4 sm:$0xff] (!%p304_p8)   ;;  %v913_v36 = vld [vmem:[%s1127_s8] ss:$12 sps:$4 sm:$0xff] (!%p304_p8)  }
  0x30   : > { %536 = vmatprep.subr.bf16.mxu0 (!%p304_p8), %v910_v34  ;;  %846 = vmatpush3.bf16.msra.mxu1 (!%p304_p8), %v912_v35  ;;  %v914_v37 = vld [vmem:[%s1127_s8 + $0x1c] ss:$12 sps:$4 sm:$0xff] (!%p304_p8)   ;;  %v916_v38 = vld [vmem:[%s1127_s8 + $0x20] ss:$12 sps:$4 sm:$0xff] (!%p304_p8)   ;;  %v917_v39 = vld [vmem:[%s1127_s8 + $0x18] ss:$12 sps:$4 sm:$0xff] (!%p304_p8)  }
  0x31   : > { %537 = vmatpush1.bf16.msra.mxu0 (!%p304_p8), %v913_v36  ;;  %847 = vmatprep.subr.bf16.mxu1 (!%p304_p8), %v982_v32  ;;  %v918_v40 = vld [vmem:[%s1127_s8 + $0x34] ss:$12 sps:$4 sm:$0xff] (!%p304_p8)   ;;  %v920_v41 = vld [vmem:[%s1127_s8 + $0x38] ss:$12 sps:$4 sm:$0xff] (!%p304_p8)   ;;  %v921_v42 = vld [vmem:[%s1127_s8 + $0x30] ss:$12 sps:$4 sm:$0xff] (!%p304_p8)   ;;  %v618_v1 = vstv (!%p304_p8), %s617_s12 }
  0x32   : > { %538 = vmatprep.subr.bf16.mxu0 %v914_v37  ;;  %v922_v43 = vld [vmem:[%s1127_s8 + $0x4c] ss:$12 sps:$4 sm:$0xff]   ;;  %v924_v44 = vld [vmem:[%s1127_s8 + $0x50] ss:$12 sps:$4 sm:$0xff]   ;;  %v925_v45 = vld [vmem:[%s1127_s8 + $0x48] ss:$12 sps:$4 sm:$0xff]  }
  0x33   : > { %v926_v46 = vld [vmem:[%s1127_s8 + $0x64] ss:$12 sps:$4 sm:$0xff]   ;;  %v928_v47 = vld [vmem:[%s1127_s8 + $0x68] ss:$12 sps:$4 sm:$0xff]   ;;  %v929_v48 = vld [vmem:[%s1127_s8 + $0x60] ss:$12 sps:$4 sm:$0xff]  }
  0x34   : > { %848 = vmatpush3.bf16.msra.mxu1 %v916_v38  ;;  %v930_v49 = vld [vmem:[%s1127_s8 + $0x7c] ss:$12 sps:$4 sm:$0xff]   ;;  %v932_v50 = vld [vmem:[%s1127_s8 + $0x80] ss:$12 sps:$4 sm:$0xff]   ;;  %v933_v51 = vld [vmem:[%s1127_s8 + $0x78] ss:$12 sps:$4 sm:$0xff]  }
  0x35   : > { %539 = vmatpush1.bf16.msra.mxu0 %v917_v39  ;;  %849 = vmatprep.subr.bf16.mxu1 %v982_v32  ;;  %v934_v52 = vld [vmem:[%s1127_s8 + $0x94] ss:$12 sps:$4 sm:$0xff]   ;;  %v936_v53 = vld [vmem:[%s1127_s8 + $0x98] ss:$12 sps:$4 sm:$0xff]   ;;  %v937_v54 = vld [vmem:[%s1127_s8 + $0x90] ss:$12 sps:$4 sm:$0xff]  }
  0x36   : > { %540 = vmatprep.subr.bf16.mxu0 %v918_v40  ;;  %v938_v55 = vld [vmem:[%s1127_s8 + $0xac] ss:$12 sps:$4 sm:$0xff]   ;;  %v940_v56 = vld [vmem:[%s1127_s8 + $0xb0] ss:$12 sps:$4 sm:$0xff]   ;;  %v941_v57 = vld [vmem:[%s1127_s8 + $0xa8] ss:$12 sps:$4 sm:$0xff]  }
  0x37   : > { %p360_p9 = scmp.lt.s32.totalorder %s359_s11, 5 }
  0x38   : > { %850 = vmatpush3.bf16.msra.mxu1 %v920_v41 }
  0x39   : > { %541 = vmatpush1.bf16.msra.mxu0 %v921_v42  ;;  %851 = vmatprep.subr.bf16.mxu1 %v982_v32  ;;  %s1190_s11 = smov (!%p360_p9, %s359_s11), 5 }
  0x3a   : > { %542 = vmatprep.subr.bf16.mxu0 %v922_v43  ;;  %s362_s15 = scalar_lea.vmem %s1180_s2, %s1190_s11  ;;  %s808_s16 = sshll.u32 %s1190_s11, 3 }
  0x3b   : > { %v622_v63 = vld [vmem:[%s362_s15] sm:$0x7]  ;;  %s372_s22 = scalar_lea.vmem %s1182_s4, %s808_s16 }
  0x3c   : > { %852 = vmatpush3.bf16.msra.mxu1 %v924_v44  ;;  %v635_v3 = vrot.slane %v622_v63, %v634_v61  ;;  %v627_v4 = vrot.slane %v622_v63, %v626_v62  ;;  %v631_v8 = vrot.slane %v622_v63, %v630_v0 }
  0x3d   : > { %543 = vmatpush1.bf16.msra.mxu0 %v925_v45  ;;  %853 = vmatprep.subr.bf16.mxu1 %v982_v32 }
  0x3e   : > { %544 = vmatprep.subr.bf16.mxu0 %v926_v46 }
  0x40   : > { %854 = vmatpush3.bf16.msra.mxu1 %v928_v47 }
  0x41   : > { %545 = vmatpush1.bf16.msra.mxu0 %v929_v48  ;;  %855 = vmatprep.subr.bf16.mxu1 %v982_v32 }
  0x42   : > { %546 = vmatprep.subr.bf16.mxu0 %v930_v49 }
  0x44   : > { %856 = vmatpush3.bf16.msra.mxu1 %v932_v50 }
  0x45   : > { %547 = vmatpush1.bf16.msra.mxu0 %v933_v51  ;;  %857 = vmatprep.subr.bf16.mxu1 %v982_v32 }
  0x46   : > { %548 = vmatprep.subr.bf16.mxu0 %v934_v52 }
  0x48   : > { %858 = vmatpush3.bf16.msra.mxu1 %v936_v53 }
  0x49   : > { %549 = vmatpush1.bf16.msra.mxu0 %v937_v54  ;;  %859 = vmatprep.subr.bf16.mxu1 %v982_v32 }
  0x4a   : > { %550 = vmatprep.subr.bf16.mxu0 %v938_v55 }
  0x4c   : > { %860 = vmatpush3.bf16.msra.mxu1 %v940_v56 }
  0x4d   : > { %551 = vmatpush1.bf16.msra.mxu0 %v941_v57 }
  0x4f   : > { %862 = vmatmul.mubr.bf16.vlgmr.msra.gmra.mrb[0].mxu1 %v375_v58 }
  0x50   : > { %569 = vmatmul.mubr.bf16.vlgmr.msra.gmra.mrb[0].mxu0 %v375_v58 }
 0x122   : > { %v611_v2 = vpop.f32.mrb[0].mxu1 }
 0x123   : > { %v621_v5 = vmul.f32 %v618_v1, %v611_v2  ;;  %v570_v6 = vpop.f32.mrb[0].mxu0  ;;  %v863_v7 = vpop.f32.mrb[1].mxu1 }
 0x124   : > { %v619_v9 = vmul.f32 %v618_v1, %v570_v6  ;;  %v572_v10 = vpop.f32.mrb[1].mxu0  ;;  %v614_v11 = vpop.f32.mrb[2].mxu1 }
 0x125   : > { %v620_v12 = vmul.f32 %v618_v1, %v572_v10  ;;  %v574_v13 = vpop.f32.mrb[2].mxu0  ;;  %v864_v14 = vpop.f32.mrb[3].mxu1  ;;  %v641_v15 = vadd.f32 %v635_v3, %v621_v5 }
 0x126   : > { %v639_v16 = vadd.f32 %v627_v4, %v619_v9  ;;  %v575_v17 = vpop.f32.mrb[3].mxu0 }
 0x127   : > { %v640_v18 = vadd.f32 %v631_v8, %v620_v12  ;;  %644 = vst [vmem:[%s372_s22 + $0x10] sm:$0xff] %v641_v15 }
 0x128   : > { %642 = vst [vmem:[%s372_s22] sm:$0xff] %v639_v16 }
 0x129   : > { %643 = vst [vmem:[%s372_s22 + $0x8] sm:$0xff] %v640_v18 }
 0x12a PF: > { %s15_s21 = sadd.s32 1, %s980_s21   ;;  %s1183_s17 = smov %s968_s18 }
 0x12b   : > { %p12_p10 = scmp.ge.s32.totalorder %s15_s21, 4   ;;  %s1184_s18 = smov %s1048_s24 }
 0x12c   : > { %s1185_s19 = smov %s976_s20  ;;  %s1186_s20 = smov %s1188_s3 }
 0x12d   :  { %14 = sbr.rel (!%p12_p10) target bundleno = 5 (0x5), region = 109 }

// kernel: discriminator_forward.11
= control target key start
LH: loop header
LB: loop body
LE: loop exit
PB: predicated region body
PF: predicated region fallthrough
CT: control target
= control target key end

     0   :  { %s640_s1 = inlined_call_operand.vmem [shape: bf16[512,128], index: 1, kind: input, shape index: {}]   ;;  %s641_s0 = inlined_call_operand.vmem [shape: bf16[8,512], index: 0, kind: input, shape index: {}]   ;;  %s642_s3 = inlined_call_operand.<no memory space> [shape: f32[1,1], index: 3, kind: input, shape index: {}]   ;;  %s643_s2 = inlined_call_operand.vmem [shape: f32[1,128], index: 2, kind: input, shape index: {}]   ;;  %s644_s4 = inlined_call_operand.vmem [shape: f32[8,128], index: 4, kind: output, shape index: {}]  }
   0x1   :  { %v468_v0 = vld [vmem:[%s640_s1 + $0x40] sm:$0xff]   ;;  %v472_v4 = vld [vmem:[%s640_s1 + $0x48] sm:$0xff]   ;;  %v476_v8 = vld [vmem:[%s640_s1 + $0x50] sm:$0xff]   ;;  %v372_v46 = vstv %s642_s3 }
   0x2   :  { %v469_v1 = vld [vmem:[%s640_s1 + $0xc0] sm:$0xff]   ;;  %424 = vmatprep.subr.bf16.mxu0 %v468_v0  ;;  %v473_v5 = vld [vmem:[%s640_s1 + $0xc8] sm:$0xff]   ;;  %v477_v9 = vld [vmem:[%s640_s1 + $0xd0] sm:$0xff]  }
   0x3   :  { %v470_v2 = vld [vmem:[%s640_s1] sm:$0xff]   ;;  %446 = vmatprep.subr.bf16.mxu1 %v469_v1  ;;  %v474_v6 = vld [vmem:[%s640_s1 + $0x8] sm:$0xff]   ;;  %v478_v10 = vld [vmem:[%s640_s1 + $0x10] sm:$0xff]  }
   0x4   :  { %v471_v3 = vld [vmem:[%s640_s1 + $0x80] sm:$0xff]   ;;  %425 = vmatpush3.bf16.msra.mxu0 %v470_v2  ;;  %v475_v7 = vld [vmem:[%s640_s1 + $0x88] sm:$0xff]   ;;  %v479_v11 = vld [vmem:[%s640_s1 + $0x90] sm:$0xff]  }
   0x5   :  { %447 = vmatpush3.bf16.msra.mxu1 %v471_v3  ;;  %426 = vmatprep.subr.bf16.mxu0 %v472_v4  ;;  %v480_v12 = vld [vmem:[%s640_s1 + $0x58] sm:$0xff]   ;;  %v484_v16 = vld [vmem:[%s640_s1 + $0x60] sm:$0xff]   ;;  %v488_v20 = vld [vmem:[%s640_s1 + $0x68] sm:$0xff]  }
   0x6   :  { %448 = vmatprep.subr.bf16.mxu1 %v473_v5  ;;  %v481_v13 = vld [vmem:[%s640_s1 + $0xd8] sm:$0xff]   ;;  %v485_v17 = vld [vmem:[%s640_s1 + $0xe0] sm:$0xff]   ;;  %v489_v21 = vld [vmem:[%s640_s1 + $0xe8] sm:$0xff]  }
   0x7   :  { %v482_v14 = vld [vmem:[%s640_s1 + $0x18] sm:$0xff]   ;;  %v486_v18 = vld [vmem:[%s640_s1 + $0x20] sm:$0xff]   ;;  %v490_v22 = vld [vmem:[%s640_s1 + $0x28] sm:$0xff]  }
   0x8   :  { %427 = vmatpush3.bf16.msra.mxu0 %v474_v6  ;;  %v483_v15 = vld [vmem:[%s640_s1 + $0x98] sm:$0xff]   ;;  %v487_v19 = vld [vmem:[%s640_s1 + $0xa0] sm:$0xff]   ;;  %v491_v23 = vld [vmem:[%s640_s1 + $0xa8] sm:$0xff]  }
   0x9   :  { %449 = vmatpush3.bf16.msra.mxu1 %v475_v7  ;;  %428 = vmatprep.subr.bf16.mxu0 %v476_v8  ;;  %v492_v24 = vld [vmem:[%s640_s1 + $0x70] sm:$0xff]   ;;  %v496_v28 = vld [vmem:[%s640_s1 + $0x78] sm:$0xff]   ;;  %v19_v32 = vld [vmem:[%s641_s0] sm:$0xff] }
   0xa   :  { %450 = vmatprep.subr.bf16.mxu1 %v477_v9  ;;  %v493_v25 = vld [vmem:[%s640_s1 + $0xf0] sm:$0xff]   ;;  %v497_v29 = vld [vmem:[%s640_s1 + $0xf8] sm:$0xff]   ;;  %v20_v33 = vld [vmem:[%s641_s0 + $0x8] sm:$0xff]  ;;  %v387_v34 = vcombine.low %v19_v32, %v19_v32  ;;  %v388_v35 = vcombine.high %v19_v32, %v19_v32 }
   0xb   :  { %v494_v26 = vld [vmem:[%s640_s1 + $0x30] sm:$0xff]   ;;  %v498_v30 = vld [vmem:[%s640_s1 + $0x38] sm:$0xff]   ;;  %v389_v36 = vcombine.low %v20_v33, %v20_v33  ;;  %v390_v37 = vcombine.high %v20_v33, %v20_v33  ;;  %v423_v50 = vld [vmem:[%s643_s2] ss:$0 sm:$0xff] }
   0xc   :  { %429 = vmatpush3.bf16.msra.mxu0 %v478_v10  ;;  %v495_v27 = vld [vmem:[%s640_s1 + $0xb0] sm:$0xff]   ;;  %v499_v31 = vld [vmem:[%s640_s1 + $0xb8] sm:$0xff]   ;;  %323 = vmatprep.mubr.bf16.mxu0 %v388_v35 }
   0xd   :  { %451 = vmatpush3.bf16.msra.mxu1 %v479_v11  ;;  %430 = vmatprep.subr.bf16.mxu0 %v480_v12 }
   0xe   :  { %452 = vmatprep.subr.bf16.mxu1 %v481_v13  ;;  %363 = vmatprep.mubr.bf16.mxu1 %v390_v37 }
  0x10   :  { %431 = vmatpush3.bf16.msra.mxu0 %v482_v14 }
  0x11   :  { %453 = vmatpush3.bf16.msra.mxu1 %v483_v15  ;;  %432 = vmatprep.subr.bf16.mxu0 %v484_v16 }
  0x12   :  { %454 = vmatprep.subr.bf16.mxu1 %v485_v17 }
  0x14   :  { %433 = vmatpush3.bf16.msra.mxu0 %v486_v18 }
  0x15   :  { %455 = vmatpush3.bf16.msra.mxu1 %v487_v19  ;;  %434 = vmatprep.subr.bf16.mxu0 %v488_v20 }
  0x16   :  { %456 = vmatprep.subr.bf16.mxu1 %v489_v21 }
  0x18   :  { %435 = vmatpush3.bf16.msra.mxu0 %v490_v22 }
  0x19   :  { %457 = vmatpush3.bf16.msra.mxu1 %v491_v23  ;;  %436 = vmatprep.subr.bf16.mxu0 %v492_v24 }
  0x1a   :  { %458 = vmatprep.subr.bf16.mxu1 %v493_v25 }
  0x1c   :  { %437 = vmatpush3.bf16.msra.mxu0 %v494_v26 }
  0x1d   :  { %459 = vmatpush3.bf16.msra.mxu1 %v495_v27  ;;  %438 = vmatprep.subr.bf16.mxu0 %v496_v28 }
  0x1e   :  { %460 = vmatprep.subr.bf16.mxu1 %v497_v29 }
  0x20   :  { %439 = vmatpush3.bf16.msra.mxu0 %v498_v30 }
  0x21   :  { %461 = vmatpush3.bf16.msra.mxu1 %v499_v31 }
  0x23   :  { %324 = vmatmul.mubr.bf16.vlgmr.msra.gmra.mrb[0].mxu0 %v387_v34 }
  0x24   :  { %364 = vmatmul.mubr.bf16.vlgmr.msra.gmra.mrb[0].mxu1 %v389_v36 }
  0xf6   :  { %v440_v38 = vpop.f32.mrb[0].mxu0 }
  0xf7   :  { %v462_v39 = vpop.f32.mrb[0].mxu1  ;;  %v441_v40 = vpop.f32.mrb[1].mxu0 }
  0xf8   :  { %v463_v41 = vpop.f32.mrb[1].mxu1  ;;  %v442_v42 = vadd.f32 %v441_v40, %v440_v38  ;;  %v443_v44 = vpop.f32.mrb[2].mxu0 }
  0xf9   :  { %v464_v43 = vadd.f32 %v463_v41, %v462_v39  ;;  %v465_v45 = vpop.f32.mrb[2].mxu1  ;;  %v444_v47 = vpop.f32.mrb[3].mxu0 }
  0xfa   :  { %v466_v48 = vpop.f32.mrb[3].mxu1 }
  0xfb   :  { %v366_v49 = vadd.f32 %v464_v43, %v442_v42 }
  0xfd   :  { %v373_v51 = vmul.f32 %v372_v46, %v366_v49 }
  0xff   :  { %v381_v52 = vadd.f32 %v423_v50, %v373_v51 }
 0x101   :  { %382 = vst [vmem:[%s644_s4] sm:$0xff] %v381_v52 }

// kernel: discriminator_forward.9
= control target key start
LH: loop header
LB: loop body
LE: loop exit
PB: predicated region body
PF: predicated region fallthrough
CT: control target
= control target key end

     0   :  { %v428_v1 = vmov 0.0   ;;  %vm429_vm0 = vmmov 0   ;;  %s542_s1 = inlined_call_operand.vmem [shape: bf16[384,128], index: 1, kind: input, shape index: {}]   ;;  %s543_s0 = inlined_call_operand.vmem [shape: bf16[8,384], index: 0, kind: input, shape index: {}]   ;;  %s544_s3 = inlined_call_operand.<no memory space> [shape: f32[1,1], index: 3, kind: input, shape index: {}]   ;;  %s545_s2 = inlined_call_operand.vmem [shape: f32[1,128], index: 2, kind: input, shape index: {}]   ;;  %s546_s4 = inlined_call_operand.vmem [shape: f32[8,128], index: 4, kind: output, shape index: {}]  }
   0x1   :  { %v401_v0 = vld [vmem:[%s542_s1 + $0x40] sm:$0xff]   ;;  %379 = vmatprep.subr.bf16.mxu1 %v428_v1  ;;  %395 = vmatprep.mubr.msk.bf16.mxu1 %vm429_vm0, %v428_v1  ;;  %v404_v4 = vld [vmem:[%s542_s1 + $0x48] sm:$0xff]   ;;  %v407_v7 = vld [vmem:[%s542_s1 + $0x50] sm:$0xff]   ;;  %v305_v35 = vstv %s544_s3 }
   0x2   :  { %v402_v2 = vld [vmem:[%s542_s1] sm:$0xff]   ;;  %348 = vmatprep.subr.bf16.mxu0 %v401_v0  ;;  %v405_v5 = vld [vmem:[%s542_s1 + $0x8] sm:$0xff]   ;;  %v408_v8 = vld [vmem:[%s542_s1 + $0x10] sm:$0xff]  }
   0x3   :  { %v403_v3 = vld [vmem:[%s542_s1 + $0x80] sm:$0xff]   ;;  %349 = vmatpush3.bf16.msra.mxu0 %v402_v2  ;;  %v406_v6 = vld [vmem:[%s542_s1 + $0x88] sm:$0xff]   ;;  %v409_v9 = vld [vmem:[%s542_s1 + $0x90] sm:$0xff]  }
   0x4   :  { %380 = vmatpush3.bf16.msra.mxu1 %v403_v3  ;;  %350 = vmatprep.subr.bf16.mxu0 %v404_v4  ;;  %v410_v10 = vld [vmem:[%s542_s1 + $0x58] sm:$0xff]   ;;  %v413_v13 = vld [vmem:[%s542_s1 + $0x60] sm:$0xff]   ;;  %v416_v16 = vld [vmem:[%s542_s1 + $0x68] sm:$0xff]  }
   0x5   :  { %381 = vmatprep.subr.bf16.mxu1 %v428_v1  ;;  %v411_v11 = vld [vmem:[%s542_s1 + $0x18] sm:$0xff]   ;;  %v414_v14 = vld [vmem:[%s542_s1 + $0x20] sm:$0xff]   ;;  %v417_v17 = vld [vmem:[%s542_s1 + $0x28] sm:$0xff]  }
   0x6   :  { %v412_v12 = vld [vmem:[%s542_s1 + $0x98] sm:$0xff]   ;;  %v415_v15 = vld [vmem:[%s542_s1 + $0xa0] sm:$0xff]   ;;  %v418_v18 = vld [vmem:[%s542_s1 + $0xa8] sm:$0xff]  }
   0x7   :  { %351 = vmatpush3.bf16.msra.mxu0 %v405_v5  ;;  %v419_v19 = vld [vmem:[%s542_s1 + $0x70] sm:$0xff]   ;;  %v422_v22 = vld [vmem:[%s542_s1 + $0x78] sm:$0xff]   ;;  %v19_v23 = vld [vmem:[%s543_s0] sm:$0xff] }
   0x8   :  { %382 = vmatpush3.bf16.msra.mxu1 %v406_v6  ;;  %352 = vmatprep.subr.bf16.mxu0 %v407_v7  ;;  %v420_v20 = vld [vmem:[%s542_s1 + $0x30] sm:$0xff]   ;;  %v321_v24 = vcombine.high %v19_v23, %v19_v23  ;;  %v423_v25 = vld [vmem:[%s542_s1 + $0x38] sm:$0xff]   ;;  %v320_v27 = vcombine.low %v19_v23, %v19_v23  ;;  %v427_v28 = vld [vmem:[%s543_s0 + $0x8] ss:$0 sps:$4 sm:$0xff]  }
   0x9   :  { %383 = vmatprep.subr.bf16.mxu1 %v428_v1  ;;  %v421_v21 = vld [vmem:[%s542_s1 + $0xb0] sm:$0xff]   ;;  %v424_v26 = vld [vmem:[%s542_s1 + $0xb8] sm:$0xff]   ;;  %v347_v40 = vld [vmem:[%s545_s2] ss:$0 sm:$0xff] }
   0xa   :  { %256 = vmatprep.mubr.bf16.mxu0 %v321_v24 }
   0xb   :  { %353 = vmatpush3.bf16.msra.mxu0 %v408_v8 }
   0xc   :  { %384 = vmatpush3.bf16.msra.mxu1 %v409_v9  ;;  %354 = vmatprep.subr.bf16.mxu0 %v410_v10 }
   0xd   :  { %385 = vmatprep.subr.bf16.mxu1 %v428_v1 }
   0xf   :  { %355 = vmatpush3.bf16.msra.mxu0 %v411_v11 }
  0x10   :  { %386 = vmatpush3.bf16.msra.mxu1 %v412_v12  ;;  %356 = vmatprep.subr.bf16.mxu0 %v413_v13 }
  0x11   :  { %387 = vmatprep.subr.bf16.mxu1 %v428_v1 }
  0x13   :  { %357 = vmatpush3.bf16.msra.mxu0 %v414_v14 }
  0x14   :  { %388 = vmatpush3.bf16.msra.mxu1 %v415_v15  ;;  %358 = vmatprep.subr.bf16.mxu0 %v416_v16 }
  0x15   :  { %389 = vmatprep.subr.bf16.mxu1 %v428_v1 }
  0x17   :  { %359 = vmatpush3.bf16.msra.mxu0 %v417_v17 }
  0x18   :  { %390 = vmatpush3.bf16.msra.mxu1 %v418_v18  ;;  %360 = vmatprep.subr.bf16.mxu0 %v419_v19 }
  0x19   :  { %391 = vmatprep.subr.bf16.mxu1 %v428_v1 }
  0x1b   :  { %361 = vmatpush3.bf16.msra.mxu0 %v420_v20 }
  0x1c   :  { %392 = vmatpush3.bf16.msra.mxu1 %v421_v21  ;;  %362 = vmatprep.subr.bf16.mxu0 %v422_v22 }
  0x1d   :  { %393 = vmatprep.subr.bf16.mxu1 %v428_v1 }
  0x1f   :  { %363 = vmatpush3.bf16.msra.mxu0 %v423_v25 }
  0x20   :  { %394 = vmatpush3.bf16.msra.mxu1 %v424_v26 }
  0x22   :  { %257 = vmatmul.mubr.bf16.vlgmr.msra.gmra.mrb[0].mxu0 %v320_v27 }
  0x23   :  { %396 = vmatmul.mubr.bf16.vlgmr.msra.gmra.mrb[0].mxu1 %v427_v28 }
  0xf5   :  { %v364_v29 = vpop.f32.mrb[0].mxu0 }
  0xf6   :  { %v298_v30 = vpop.f32.mrb[0].mxu1  ;;  %v365_v31 = vpop.f32.mrb[1].mxu0 }
  0xf7   :  { %v366_v32 = vadd.f32 %v365_v31, %v364_v29  ;;  %v397_v33 = vpop.f32.mrb[1].mxu1  ;;  %v367_v34 = vpop.f32.mrb[2].mxu0 }
  0xf8   :  { %v301_v36 = vpop.f32.mrb[2].mxu1  ;;  %v368_v37 = vpop.f32.mrb[3].mxu0 }
  0xf9   :  { %v299_v38 = vadd.f32 %v366_v32, %v298_v30  ;;  %v398_v39 = vpop.f32.mrb[3].mxu1 }
  0xfb   :  { %v306_v41 = vmul.f32 %v305_v35, %v299_v38 }
  0xfd   :  { %v314_v42 = vadd.f32 %v347_v40, %v306_v41 }
  0xff   :  { %315 = vst [vmem:[%s546_s4] sm:$0xff] %v314_v42 }

</bundles_post_ra>
